<compile_context>
chip_gen: v5e
topology: v5e:2x2
jax: 0.10.0
libtpu: 0.0.40
codegen_flags: <defaults>
</compile_context>

<pallas_src>
import numpy as np
import jax
import jax.numpy as jnp
from jax.experimental import pallas as pl
from jax.experimental.pallas import tpu as pltpu

PATCH_LEN = 8
STRIDE = 8
DIM = PATCH_LEN * PATCH_LEN          # 64: patch embedding width (patch_len ** 2)
ALPHA = 0.3                          # configs.alpha for the EMA decomposition
EPS = 1e-5                           # BatchNorm / LayerNorm eps (PyTorch default)

_HIGHEST = jax.lax.Precision.HIGHEST

# front-end packed-vector rows (row width P*64)
FP_B1, FP_BN1G, FP_BN1B, FP_DW, FP_B2, FP_C1B = 0, 1, 2, 3, 4, 5
FP_BN2G, FP_BN2B, FP_C2B, FP_BN3G, FP_BN3B = 6, 7, 8, 9, 10
FP_ROWS = 11

# head packed-vector rows (row width pad128(2L))
HP_B3, HP_B5, HP_LN1G, HP_LN1B, HP_B6, HP_LN2G, HP_LN2B, HP_B8 = range(8)
HP_ROWS = 8


# ----------------------------------------------------------------------------
# small math helpers (shared by kernel and reference)
# ----------------------------------------------------------------------------
def _gelu(x):
    # tanh-approximate GELU: transcendental stays on the EUP slot.
    return 0.5 * x * (1.0 + jnp.tanh(0.7978845608028654 * (x + 0.044715 * x * x * x)))


def _layernorm_padded(x, g, b, true_n):
    """LayerNorm over the first `true_n` lanes of a zero-padded row (pad lanes stay 0)."""
    inv = 1.0 / float(true_n)
    mean = jnp.sum(x, axis=-1, keepdims=True) * inv
    ex2 = jnp.sum(x * x, axis=-1, keepdims=True) * inv
    var = ex2 - mean * mean
    return (x - mean) * jax.lax.rsqrt(var + EPS) * g + b


def _round_up(n, m):
    return ((n + m - 1) // m) * m


def _row_block(n):
    # multiples of 16 keep bf16 row blocks sublane-aligned; fall back to a single block.
    for bn in (512, 256, 128, 64, 32, 16):
        if n % bn == 0:
            return bn
    return n


def _full_spec(shape):
    nd = len(shape)
    return pl.BlockSpec(shape, lambda *args, nd=nd: (0,) * nd)


def _padded_bytes(shape, dtype):
    dt = jnp.dtype(dtype)
    sub = {4: 8, 2: 16, 1: 32}.get(dt.itemsize, 8)
    if len(shape) < 2:
        r, c, lead = 1, (shape[0] if shape else 1), 1
    else:
        r, c = shape[-2], shape[-1]
        lead = int(np.prod(shape[:-2])) if len(shape) > 2 else 1
    rp = ((r + sub - 1) // sub) * sub
    cp = ((c + 127) // 128) * 128
    return lead * rp * cp * dt.itemsize


def _vmem_limit(block_shape_dtypes, interm_bytes):
    # 2x for default double-buffering of pipelined blocks, + live f32 intermediates,
    # clamped to a generation-safe ceiling (v7x has 64 MiB VMEM per TensorCore).
    need = 2 * sum(_padded_bytes(s, d) for s, d in block_shape_dtypes) + interm_bytes
    return int(min(max(need + (4 << 20), 16 << 20), 64 << 20))


# ----------------------------------------------------------------------------
# Kernel A: seasonal front-end (lane-dense, fully batched BatchNorms), grid=(1,)
# ----------------------------------------------------------------------------
def xpatch_frontend_kernel(s_ref, w1k_ref, w2k_ref, rmatb_ref, wck_ref,
                           g64_ref, e64_ref, g8_ref, e8_ref, fp_ref, zn_ref):
    """s_ref: (N, P*8) f32 seasonal patches (lane-dense);  zn_ref: (N, P*8) bf16."""
    N = s_ref.shape[0]
    PW8 = s_ref.shape[1]
    PW64 = w1k_ref.shape[1]
    fp = fp_ref[...]

    def frow(r, w):
        return fp[r:r + 1, 0:w]

    def bn_stats(x, g_mat, e_mat, count):
        # per-patch batch stats via 0/1 lane-group matmuls.  LHS is a single row, so
        # 'highest' precision keeps the stats effectively exact f32 at negligible cost.
        inv = 1.0 / float(count)
        colsum = jnp.sum(x, axis=0, keepdims=True)
        mean_g = jnp.dot(colsum, g_mat, precision=_HIGHEST,
                         preferred_element_type=jnp.float32) * inv
        mean_row = jnp.dot(mean_g, e_mat, precision=_HIGHEST,
                           preferred_element_type=jnp.float32)
        xc = x - mean_row
        var_g = jnp.dot(jnp.sum(xc * xc, axis=0, keepdims=True), g_mat,
                        precision=_HIGHEST, preferred_element_type=jnp.float32) * inv
        rstd_row = jnp.dot(jax.lax.rsqrt(var_g + EPS), e_mat, precision=_HIGHEST,
                           preferred_element_type=jnp.float32)
        return xc, rstd_row

    s_bf = s_ref[...].astype(jnp.bfloat16)

    # fc1 as one block-diagonal kron(I_P, W1) matmul (bf16 operands, f32 accum) + GELU
    h = jnp.dot(s_bf, w1k_ref[...],
                preferred_element_type=jnp.float32) + frow(FP_B1, PW64)
    h = _gelu(h)

    # BN1 (per patch = 64-lane group), fully batched
    hc, rstd1 = bn_stats(h, g64_ref[...], e64_ref[...], N * DIM)
    a = hc * (rstd1 * frow(FP_BN1G, PW64)) + frow(FP_BN1B, PW64)
    a_bf = a.astype(jnp.bfloat16)

    # residual fc2 as one block-diagonal kron(I_P, W2) matmul -> (N, P*8)
    r2 = jnp.dot(a_bf, w2k_ref[...],
                 preferred_element_type=jnp.float32) + frow(FP_B2, PW8)

    # depthwise conv1: per-lane weights + shared 0/1 8-lane group-sum matmul
    prod = a_bf * frow(FP_DW, PW64).astype(jnp.bfloat16)
    cpre = jnp.dot(prod, rmatb_ref[...], preferred_element_type=jnp.float32)
    c1 = _gelu(cpre + frow(FP_C1B, PW8))

    # BN2 + residual add (lane-dense (N, P*8), no concatenations)
    cc, rstd2 = bn_stats(c1, g8_ref[...], e8_ref[...], N * PATCH_LEN)
    y8 = cc * (rstd2 * frow(FP_BN2G, PW8)) + frow(FP_BN2B, PW8) + r2

    # pointwise conv2: one kron(Wc^T, I8) matmul
    z = jnp.dot(y8.astype(jnp.bfloat16), wck_ref[...],
                preferred_element_type=jnp.float32) + frow(FP_C2B, PW8)
    z = _gelu(z)

    # BN3
    zc, rstd3 = bn_stats(z, g8_ref[...], e8_ref[...], N * PATCH_LEN)
    zn = zc * (rstd3 * frow(FP_BN3G, PW8)) + frow(FP_BN3B, PW8)
    zn_ref[...] = zn.astype(jnp.bfloat16)


# ----------------------------------------------------------------------------
# Kernel B: flatten head + trend stream + (folded) fc8, row-tiled over N
# ----------------------------------------------------------------------------
def _make_head_kernel(true_2l, true_half):
    def head_kernel(zn_ref, t_ref, w3_ref, w48_ref, w5_ref, w6_ref, w78_ref,
                    hp_ref, out_ref):
        hp = hp_ref[...]
        W2p = w3_ref.shape[1]
        Hp = w6_ref.shape[1]
        Lp = out_ref.shape[1]

        def hrow(r, w):
            return hp[r:r + 1, 0:w]

        # seasonal head: fc3 + GELU, then folded (fc4 . fc8_top)
        h3 = _gelu(jnp.dot(zn_ref[...], w3_ref[...],
                           preferred_element_type=jnp.float32) + hrow(HP_B3, W2p))
        out = jnp.dot(h3.astype(jnp.bfloat16), w48_ref[...],
                      preferred_element_type=jnp.float32)

        # trend stream: fc5(+pool) -> LN1 -> fc6(+pool) -> LN2 -> folded (fc7 . fc8_bot)
        y = jnp.dot(t_ref[...].astype(jnp.bfloat16), w5_ref[...],
                    preferred_element_type=jnp.float32) + hrow(HP_B5, W2p)
        y = _layernorm_padded(y, hrow(HP_LN1G, W2p), hrow(HP_LN1B, W2p), true_2l)
        y = jnp.dot(y.astype(jnp.bfloat16), w6_ref[...],
                    preferred_element_type=jnp.float32) + hrow(HP_B6, Hp)
        y = _layernorm_padded(y, hrow(HP_LN2G, Hp), hrow(HP_LN2B, Hp), true_half)
        out = out + jnp.dot(y.astype(jnp.bfloat16), w78_ref[...],
                            preferred_element_type=jnp.float32)

        out_ref[...] = out + hrow(HP_B8, Lp)

    return head_kernel


# ----------------------------------------------------------------------------
# host glue: EMA decomposition + patching + pallas_call wrappers
# ----------------------------------------------------------------------------
def _ema(x, alpha):
    """xPatch EMA along axis=1 of (B, T, C): s_0 = x_0 ; s_t = a*x_t + (1-a)*s_{t-1}.

    Log-depth associative scan over affine maps (a_t, b_t)."""
    a = jnp.full_like(x, 1.0 - alpha)
    b = jnp.concatenate([x[:, :1, :], alpha * x[:, 1:, :]], axis=1)

    def combine(lhs, rhs):
        al, bl = lhs
        ar, br = rhs
        return al * ar, ar * bl + br

    _, s = jax.lax.associative_scan(combine, (a, b), axis=1)
    return s


def xpath_forward_pallas(x, prep, alpha=ALPHA):
    B, C, L = x.shape
    N = B * C
    assert L % PATCH_LEN == 0 and L >= PATCH_LEN and L % 2 == 0
    P = L // PATCH_LEN + 1                     # +1: padding_patch == 'end'
    PW8 = P * PATCH_LEN
    W2p, Hp, Lp = _round_up(2 * L, 128), _round_up(L // 2, 128), _round_up(L, 128)

    xp = jnp.transpose(x, (0, 2, 1))           # xPathModel: x.permute(0, 2, 1)
    trend = _ema(xp, alpha)                    # DECOMP (ma_type='ema')
    seasonal = xp - trend
    s = jnp.transpose(seasonal, (0, 2, 1)).reshape(N, L)
    t = jnp.transpose(trend, (0, 2, 1)).reshape(N, L)

    # ReplicationPad1d((0, stride)) + unfold(8, 8) == contiguous 8-lane blocks, lane-dense
    s_ld = jnp.concatenate([s, jnp.repeat(s[:, -1:], STRIDE, axis=1)], axis=1)  # (N, P*8)

    # ---- kernel A: seasonal front-end (batch-stat BatchNorms -> single grid step) ----
    fe_args = [s_ld, prep['w1k'], prep['w2k'], prep['rmatb'], prep['wck'],
               prep['g64'], prep['e64'], prep['g8'], prep['e8'], prep['fpack']]
    fe_blocks = [(a.shape, a.dtype) for a in fe_args] + [((N, PW8), jnp.bfloat16)]
    interm_a = 10 * _padded_bytes((N, P * DIM), jnp.float32)
    zn = pl.pallas_call(
        xpatch_frontend_kernel,
        out_shape=jax.ShapeDtypeStruct((N, PW8), jnp.bfloat16),
        grid=(1,),
        in_specs=[_full_spec(a.shape) for a in fe_args],
        out_specs=_full_spec((N, PW8)),
        compiler_params=pltpu.CompilerParams(
            dimension_semantics=("arbitrary",),
            vmem_limit_bytes=_vmem_limit(fe_blocks, interm_a)),
    )(*fe_args)

    # ---- kernel B: head + trend, row-tiled ("parallel" -> v7x megacore) ----
    bn = _row_block(N)
    hd_args = [zn, t, prep['w3'], prep['w48'], prep['w5'], prep['w6'], prep['w78'],
               prep['hpack']]
    row_specs = [pl.BlockSpec((bn, PW8), lambda i: (i, 0)),
                 pl.BlockSpec((bn, L), lambda i: (i, 0))]
    w_specs = [pl.BlockSpec(a.shape, lambda i: (0, 0)) for a in hd_args[2:]]
    hd_blocks = ([((bn, PW8), jnp.bfloat16), ((bn, L), jnp.float32)]
                 + [(a.shape, a.dtype) for a in hd_args[2:]]
                 + [((bn, Lp), jnp.float32)])
    interm_b = 8 * _padded_bytes((bn, W2p), jnp.float32)
    out_p = pl.pallas_call(
        _make_head_kernel(2 * L, L // 2),
        out_shape=jax.ShapeDtypeStruct((N, Lp), jnp.float32),
        grid=(N // bn,),
        in_specs=row_specs + w_specs,
        out_specs=pl.BlockSpec((bn, Lp), lambda i: (i, 0)),
        compiler_params=pltpu.CompilerParams(
            dimension_semantics=("parallel",),
            vmem_limit_bytes=_vmem_limit(hd_blocks, interm_b)),
    )(*hd_args)

    # Network reshapes to (B, C, pred); xPathModel permutes twice -> same layout.
    return out_p[:, :L].reshape(B, C, L)


# ----------------------------------------------------------------------------
# parameter construction (synthetic init; shapes from __init__) + host-side prep
# ----------------------------------------------------------------------------
def init_raw_params(key, seq_len):
    L = seq_len
    P = L // PATCH_LEN + 1
    keys = iter(jax.random.split(key, 24))

    def linear(fan_in, fan_out):
        k1, k2 = jax.random.split(next(keys))
        w = jax.random.normal(k1, (fan_in, fan_out), jnp.float32) / np.sqrt(fan_in)
        b = 0.02 * jax.random.normal(k2, (1, fan_out), jnp.float32)
        return w, b                            # stored as (in, out) == torch_weight.T

    def norm_affine(n):
        k1, k2 = jax.random.split(next(keys))
        g = 1.0 + 0.05 * jax.random.normal(k1, (1, n), jnp.float32)
        b = 0.05 * jax.random.normal(k2, (1, n), jnp.float32)
        return g, b

    p = {}
    p['fc1_w'], p['fc1_b'] = linear(PATCH_LEN, DIM)
    p['bn1_g'], p['bn1_b'] = norm_affine(P)
    k1, k2 = jax.random.split(next(keys))
    p['conv1_dw'] = jax.random.normal(k1, (P, PATCH_LEN), jnp.float32) / np.sqrt(PATCH_LEN)
    p['conv1_b'] = 0.02 * jax.random.normal(k2, (1, P), jnp.float32)
    p['bn2_g'], p['bn2_b'] = norm_affine(P)
    p['fc2_w'], p['fc2_b'] = linear(DIM, PATCH_LEN)
    k1, k2 = jax.random.split(next(keys))
    p['conv2_w'] = jax.random.normal(k1, (P, P), jnp.float32) / np.sqrt(P)
    p['conv2_b'] = 0.02 * jax.random.normal(k2, (1, P), jnp.float32)
    p['bn3_g'], p['bn3_b'] = norm_affine(P)
    p['fc3_w'], p['fc3_b'] = linear(P * PATCH_LEN, 2 * L)
    p['fc4_w'], p['fc4_b'] = linear(2 * L, L)
    p['fc5_w'], p['fc5_b'] = linear(L, 4 * L)
    p['ln1_g'], p['ln1_b'] = norm_affine(2 * L)
    p['fc6_w'], p['fc6_b'] = linear(2 * L, L)
    p['ln2_g'], p['ln2_b'] = norm_affine(L // 2)
    p['fc7_w'], p['fc7_b'] = linear(L // 2, L)
    p['fc8_w'], p['fc8_b'] = linear(2 * L, L)
    return p


def _pool_matrix(n_in):
    # AvgPool1d(kernel_size=2) as an (n_in, n_in//2) matrix (prep time only)
    m = np.zeros((n_in, n_in // 2), np.float32)
    m[np.arange(n_in), np.arange(n_in) // 2] = 0.5
    return jnp.asarray(m)


def prepare_params(raw, L):
    """Host-side prep (batch-size independent): kron/group matrices, pool + fc8 folding,
    zero-padded lane-dense head widths, bf16 weights, packed small vectors."""
    P = L // PATCH_LEN + 1
    PW8, PW64 = P * PATCH_LEN, P * DIM
    W2p, Hp, Lp = _round_up(2 * L, 128), _round_up(L // 2, 128), _round_up(L, 128)
    bf = jnp.bfloat16
    prep = {}

    eyeP = jnp.eye(P, dtype=jnp.float32)
    # block-diagonal fc1 / fc2 (kron by identity is exact in bf16)
    prep['w1k'] = jnp.kron(eyeP, raw['fc1_w']).astype(bf)                   # (P*8, P*64)
    prep['w2k'] = jnp.kron(eyeP, raw['fc2_w']).astype(bf)                   # (P*64, P*8)
    # depthwise conv1 8-lane group sum and pointwise conv2 kron(Wc^T, I8)
    prep['rmatb'] = jnp.kron(jnp.eye(PW8, dtype=jnp.float32),
                             jnp.ones((PATCH_LEN, 1), jnp.float32)).astype(bf)
    prep['wck'] = jnp.kron(raw['conv2_w'].T,
                           jnp.eye(PATCH_LEN, dtype=jnp.float32)).astype(bf)
    # 0/1 group-sum / expansion matrices for the fully batched BatchNorm stats
    g8 = jnp.kron(eyeP, jnp.ones((PATCH_LEN, 1), jnp.float32))              # (P*8, P)
    g64 = jnp.kron(eyeP, jnp.ones((DIM, 1), jnp.float32))                   # (P*64, P)
    prep['g8'], prep['e8'] = g8, g8.T
    prep['g64'], prep['e64'] = g64, g64.T

    def put(v, r, vec):
        vec = jnp.asarray(vec).reshape(-1)
        return v.at[r, :vec.shape[0]].set(vec)

    # front-end packed vectors (bias / affine / depthwise weights), independent of N
    fpack = jnp.zeros((FP_ROWS, PW64), jnp.float32)
    fpack = put(fpack, FP_B1, jnp.tile(raw['fc1_b'], (1, P)))
    fpack = put(fpack, FP_BN1G, jnp.repeat(raw['bn1_g'], DIM, axis=1))
    fpack = put(fpack, FP_BN1B, jnp.repeat(raw['bn1_b'], DIM, axis=1))
    fpack = put(fpack, FP_DW, jnp.tile(raw['conv1_dw'], (1, PATCH_LEN)).reshape(1, PW64))
    fpack = put(fpack, FP_B2, jnp.tile(raw['fc2_b'], (1, P)))
    fpack = put(fpack, FP_C1B, jnp.repeat(raw['conv1_b'], PATCH_LEN, axis=1))
    fpack = put(fpack, FP_BN2G, jnp.repeat(raw['bn2_g'], PATCH_LEN, axis=1))
    fpack = put(fpack, FP_BN2B, jnp.repeat(raw['bn2_b'], PATCH_LEN, axis=1))
    fpack = put(fpack, FP_C2B, jnp.repeat(raw['conv2_b'], PATCH_LEN, axis=1))
    fpack = put(fpack, FP_BN3G, jnp.repeat(raw['bn3_g'], PATCH_LEN, axis=1))
    fpack = put(fpack, FP_BN3B, jnp.repeat(raw['bn3_b'], PATCH_LEN, axis=1))
    prep['fpack'] = fpack

    # head: pool folding (exact), fc4/fc7 folded into fc8 (f32 products before bf16 cast)
    p1 = _pool_matrix(4 * L)
    p2 = _pool_matrix(L)
    w5f = jnp.dot(raw['fc5_w'], p1, precision=_HIGHEST)
    b5f = jnp.dot(raw['fc5_b'], p1, precision=_HIGHEST)
    w6f = jnp.dot(raw['fc6_w'], p2, precision=_HIGHEST)
    b6f = jnp.dot(raw['fc6_b'], p2, precision=_HIGHEST)
    w8_top, w8_bot = raw['fc8_w'][:L, :], raw['fc8_w'][L:, :]
    w48 = jnp.dot(raw['fc4_w'], w8_top, precision=_HIGHEST)                 # (2L, L)
    w78 = jnp.dot(raw['fc7_w'], w8_bot, precision=_HIGHEST)                 # (L/2, L)
    b8c = (jnp.dot(raw['fc4_b'], w8_top, precision=_HIGHEST)
           + jnp.dot(raw['fc7_b'], w8_bot, precision=_HIGHEST) + raw['fc8_b'])
    prep['b5f'], prep['b6f'], prep['b8c'] = b5f, b6f, b8c                   # for the ref

    def padw(w, rows, cols):
        out = jnp.zeros((rows, cols), jnp.float32)
        return out.at[:w.shape[0], :w.shape[1]].set(w)

    prep['w3'] = padw(raw['fc3_w'], PW8, W2p).astype(bf)
    prep['w48'] = padw(w48, W2p, Lp).astype(bf)
    prep['w5'] = padw(w5f, L, W2p).astype(bf)
    prep['w6'] = padw(w6f, W2p, Hp).astype(bf)
    prep['w78'] = padw(w78, Hp, Lp).astype(bf)

    hpack = jnp.zeros((HP_ROWS, W2p), jnp.float32)
    hpack = put(hpack, HP_B3, raw['fc3_b'])
    hpack = put(hpack, HP_B5, b5f)
    hpack = put(hpack, HP_LN1G, raw['ln1_g'])
    hpack = put(hpack, HP_LN1B, raw['ln1_b'])
    hpack = put(hpack, HP_B6, b6f)
    hpack = put(hpack, HP_LN2G, raw['ln2_g'])
    hpack = put(hpack, HP_LN2B, raw['ln2_b'])
    hpack = put(hpack, HP_B8, b8c)
    prep['hpack'] = hpack
    return prep


# ----------------------------------------------------------------------------
# pure-JAX reference (mirrors the PyTorch graph; same bf16 cast points as the kernel)
# ----------------------------------------------------------------------------
def _bn_ref(x, g, b):
    m = jnp.mean(x, axis=(0, 2), keepdims=True)
    v = jnp.mean((x - m) ** 2, axis=(0, 2), keepdims=True)
    return (x - m) / jnp.sqrt(v + EPS) * g.reshape(1, -1, 1) + b.reshape(1, -1, 1)


def _ln_ref(x, g, b):
    m = jnp.mean(x, axis=-1, keepdims=True)
    v = jnp.mean((x - m) ** 2, axis=-1, keepdims=True)
    return (x - m) / jnp.sqrt(v + EPS) * g + b


def xpath_forward_ref(x, raw, prep, alpha=ALPHA):
    B, C, L = x.shape
    N = B * C
    P = L // PATCH_LEN + 1
    bf = jnp.bfloat16

    xp = jnp.transpose(x, (0, 2, 1))
    trend = _ema(xp, alpha)
    seasonal = xp - trend
    s = jnp.transpose(seasonal, (0, 2, 1)).reshape(N, L)
    t = jnp.transpose(trend, (0, 2, 1)).reshape(N, L)

    # seasonal stream
    s = jnp.concatenate([s, jnp.repeat(s[:, -1:], STRIDE, axis=1)], axis=1)
    s = s.reshape(N, P, PATCH_LEN)
    x1 = jnp.einsum('npk,kd->npd', s.astype(bf), raw['fc1_w'].astype(bf),
                    preferred_element_type=jnp.float32) + raw['fc1_b']
    x1 = _bn_ref(_gelu(x1), raw['bn1_g'], raw['bn1_b'])
    res = x1
    x4 = x1.reshape(N, P, PATCH_LEN, PATCH_LEN)
    prod = x4.astype(bf) * raw['conv1_dw'].astype(bf).reshape(1, P, 1, PATCH_LEN)
    x2 = jnp.sum(prod.astype(jnp.float32), axis=-1) + raw['conv1_b'].reshape(1, P, 1)
    x2 = _bn_ref(_gelu(x2), raw['bn2_g'], raw['bn2_b'])
    x2 = x2 + (jnp.einsum('npd,dk->npk', res.astype(bf), raw['fc2_w'].astype(bf),
                          preferred_element_type=jnp.float32) + raw['fc2_b'])
    x3 = jnp.einsum('pq,nqj->npj', raw['conv2_w'].astype(bf), x2.astype(bf),
                    preferred_element_type=jnp.float32) + raw['conv2_b'].reshape(1, P, 1)
    x3 = _bn_ref(_gelu(x3), raw['bn3_g'], raw['bn3_b'])
    flat = x3.reshape(N, P * PATCH_LEN)

    # head + trend (same folded / bf16 weights as the kernel, pad columns sliced off)
    W2, H = 2 * L, L // 2
    h3 = _gelu(jnp.dot(flat.astype(bf), prep['w3'][:, :W2],
                       preferred_element_type=jnp.float32) + raw['fc3_b'])
    s_part = jnp.dot(h3.astype(bf), prep['w48'][:W2, :L],
                     preferred_element_type=jnp.float32)

    y = jnp.dot(t.astype(bf), prep['w5'][:, :W2],
                preferred_element_type=jnp.float32) + prep['b5f']
    y = _ln_ref(y, raw['ln1_g'], raw['ln1_b'])
    y = jnp.dot(y.astype(bf), prep['w6'][:W2, :H],
                preferred_element_type=jnp.float32) + prep['b6f']
    y = _ln_ref(y, raw['ln2_g'], raw['ln2_b'])
    t_part = jnp.dot(y.astype(bf), prep['w78'][:H, :L],
                     preferred_element_type=jnp.float32)

    out = s_part + t_part + prep['b8c']
    return out.reshape(B, C, L)


if __name__ == "__main__":
    B, C, L = 2, 4, 16                # batch, channels (c_in), seq_len == pred_len (item)
    key = jax.random.PRNGKey(0)
    kx, kp = jax.random.split(key)
    x = jax.random.normal(kx, (B, C, L), dtype=jnp.float32)

    raw = init_raw_params(kp, L)
    prep = prepare_params(raw, L)

    out = jax.block_until_ready(xpath_forward_pallas(x, prep))
    ref = jax.block_until_ready(xpath_forward_ref(x, raw, prep))

    assert out.shape == (B, C, L), out.shape
    err = float(jnp.max(jnp.abs(out - ref)))
    assert np.isfinite(err) and err < 2e-3, f"kernel vs reference mismatch: {err}"
    print("KERNEL_OK")
</pallas_src>

<mosaic_0001>
module attributes {stable_mosaic.version = 11 : i64} {
  func.func @xpatch_frontend_kernel(%arg0: i32, %arg1: memref<8x24xf32, #tpu.memory_space<vmem>>, %arg2: memref<24x192xbf16, #tpu.memory_space<vmem>>, %arg3: memref<192x24xbf16, #tpu.memory_space<vmem>>, %arg4: memref<192x24xbf16, #tpu.memory_space<vmem>>, %arg5: memref<24x24xbf16, #tpu.memory_space<vmem>>, %arg6: memref<192x3xf32, #tpu.memory_space<vmem>>, %arg7: memref<3x192xf32, #tpu.memory_space<vmem>>, %arg8: memref<24x3xf32, #tpu.memory_space<vmem>>, %arg9: memref<3x24xf32, #tpu.memory_space<vmem>>, %arg10: memref<11x192xf32, #tpu.memory_space<vmem>>, %arg11: memref<8x24xbf16, #tpu.memory_space<vmem>>) attributes {dimension_semantics = [#tpu.dimension_semantics<arbitrary>], iteration_bounds = array<i64: 1>, scalar_prefetch = 0 : i64, scratch_operands = 0 : i64, tpu.core_type = #tpu.core_type<tc>, window_params = [{pipeline_mode = #tpu.pipeline_mode<synchronous>, transform_indices = @transform_0, window_bounds = array<i64: 8, 24>}, {pipeline_mode = #tpu.pipeline_mode<synchronous>, transform_indices = @transform_1, window_bounds = array<i64: 24, 192>}, {pipeline_mode = #tpu.pipeline_mode<synchronous>, transform_indices = @transform_2, window_bounds = array<i64: 192, 24>}, {pipeline_mode = #tpu.pipeline_mode<synchronous>, transform_indices = @transform_3, window_bounds = array<i64: 192, 24>}, {pipeline_mode = #tpu.pipeline_mode<synchronous>, transform_indices = @transform_4, window_bounds = array<i64: 24, 24>}, {pipeline_mode = #tpu.pipeline_mode<synchronous>, transform_indices = @transform_5, window_bounds = array<i64: 192, 3>}, {pipeline_mode = #tpu.pipeline_mode<synchronous>, transform_indices = @transform_6, window_bounds = array<i64: 3, 192>}, {pipeline_mode = #tpu.pipeline_mode<synchronous>, transform_indices = @transform_7, window_bounds = array<i64: 24, 3>}, {pipeline_mode = #tpu.pipeline_mode<synchronous>, transform_indices = @transform_8, window_bounds = array<i64: 3, 24>}, {pipeline_mode = #tpu.pipeline_mode<synchronous>, transform_indices = @transform_9, window_bounds = array<i64: 11, 192>}, {pipeline_mode = #tpu.pipeline_mode<synchronous>, transform_indices = @transform_10, window_bounds = array<i64: 8, 24>}]} {
    %c0 = arith.constant 0 : index
    %c0_0 = arith.constant 0 : index
    %0 = vector.load %arg10[%c0, %c0_0] : memref<11x192xf32, #tpu.memory_space<vmem>>, vector<11x192xf32>
    %c0_1 = arith.constant 0 : index
    %c0_2 = arith.constant 0 : index
    %1 = vector.load %arg1[%c0_1, %c0_2] : memref<8x24xf32, #tpu.memory_space<vmem>>, vector<8x24xf32>
    %2 = arith.truncf %1 : vector<8x24xf32> to vector<8x24xbf16>
    %c0_3 = arith.constant 0 : index
    %c0_4 = arith.constant 0 : index
    %3 = vector.load %arg2[%c0_3, %c0_4] : memref<24x192xbf16, #tpu.memory_space<vmem>>, vector<24x192xbf16>
    %cst = arith.constant dense<0.000000e+00> : vector<8x192xf32>
    %4 = tpu.matmul %2, %3, %cst {dimension_numbers = #tpu.dot_dimension_numbers<[1], [0], [0], [1], [0, 0, 1, 1], [], []>} : vector<8x24xbf16>, vector<24x192xbf16>, vector<8x192xf32> -> vector<8x192xf32>
    %5 = vector.extract_strided_slice %0 {offsets = [0, 0], sizes = [1, 192], strides = [1, 1]} : vector<11x192xf32> to vector<1x192xf32>
    %6 = vector.broadcast %5 : vector<1x192xf32> to vector<8x192xf32>
    %7 = arith.addf %4, %6 : vector<8x192xf32>
    %cst_5 = arith.constant 5.000000e-01 : f32
    %8 = vector.broadcast %cst_5 : f32 to vector<8x192xf32>
    %9 = arith.mulf %8, %7 : vector<8x192xf32>
    %cst_6 = arith.constant 4.471500e-02 : f32
    %10 = vector.broadcast %cst_6 : f32 to vector<8x192xf32>
    %11 = arith.mulf %10, %7 : vector<8x192xf32>
    %12 = arith.mulf %11, %7 : vector<8x192xf32>
    %13 = arith.mulf %12, %7 : vector<8x192xf32>
    %14 = arith.addf %7, %13 : vector<8x192xf32>
    %cst_7 = arith.constant 0.797884583 : f32
    %15 = vector.broadcast %cst_7 : f32 to vector<8x192xf32>
    %16 = arith.mulf %15, %14 : vector<8x192xf32>
    %17 = math.tanh %16 : vector<8x192xf32>
    %cst_8 = arith.constant 1.000000e+00 : f32
    %18 = vector.broadcast %cst_8 : f32 to vector<8x192xf32>
    %19 = arith.addf %18, %17 : vector<8x192xf32>
    %20 = arith.mulf %9, %19 : vector<8x192xf32>
    %c0_9 = arith.constant 0 : index
    %c0_10 = arith.constant 0 : index
    %21 = vector.load %arg6[%c0_9, %c0_10] : memref<192x3xf32, #tpu.memory_space<vmem>>, vector<192x3xf32>
    %c0_11 = arith.constant 0 : index
    %c0_12 = arith.constant 0 : index
    %22 = vector.load %arg7[%c0_11, %c0_12] : memref<3x192xf32, #tpu.memory_space<vmem>>, vector<3x192xf32>
    %cst_13 = arith.constant dense<0.000000e+00> : vector<192xf32>
    %23 = vector.multi_reduction <add>, %20, %cst_13 [0] : vector<8x192xf32> to vector<192xf32>
    %24 = vector.shape_cast %23 : vector<192xf32> to vector<1x192xf32>
    %cst_14 = arith.constant dense<0.000000e+00> : vector<1x3xf32>
    %25 = tpu.matmul %24, %21, %cst_14 {dimension_numbers = #tpu.dot_dimension_numbers<[1], [0], [0], [1], [0, 0, 1, 1], [], []>, precision = #tpu.contract_precision<fp32>} : vector<1x192xf32>, vector<192x3xf32>, vector<1x3xf32> -> vector<1x3xf32>
    %cst_15 = arith.constant 0.001953125 : f32
    %26 = vector.broadcast %cst_15 : f32 to vector<1x3xf32>
    %27 = arith.mulf %25, %26 : vector<1x3xf32>
    %cst_16 = arith.constant dense<0.000000e+00> : vector<1x192xf32>
    %28 = tpu.matmul %27, %22, %cst_16 {dimension_numbers = #tpu.dot_dimension_numbers<[1], [0], [0], [1], [0, 0, 1, 1], [], []>, precision = #tpu.contract_precision<fp32>} : vector<1x3xf32>, vector<3x192xf32>, vector<1x192xf32> -> vector<1x192xf32>
    %29 = vector.broadcast %28 : vector<1x192xf32> to vector<8x192xf32>
    %30 = arith.subf %20, %29 : vector<8x192xf32>
    %31 = arith.mulf %30, %30 : vector<8x192xf32>
    %cst_17 = arith.constant dense<0.000000e+00> : vector<192xf32>
    %32 = vector.multi_reduction <add>, %31, %cst_17 [0] : vector<8x192xf32> to vector<192xf32>
    %33 = vector.shape_cast %32 : vector<192xf32> to vector<1x192xf32>
    %cst_18 = arith.constant dense<0.000000e+00> : vector<1x3xf32>
    %34 = tpu.matmul %33, %21, %cst_18 {dimension_numbers = #tpu.dot_dimension_numbers<[1], [0], [0], [1], [0, 0, 1, 1], [], []>, precision = #tpu.contract_precision<fp32>} : vector<1x192xf32>, vector<192x3xf32>, vector<1x3xf32> -> vector<1x3xf32>
    %cst_19 = arith.constant 0.001953125 : f32
    %35 = vector.broadcast %cst_19 : f32 to vector<1x3xf32>
    %36 = arith.mulf %34, %35 : vector<1x3xf32>
    %cst_20 = arith.constant 9.99999974E-6 : f32
    %37 = vector.broadcast %cst_20 : f32 to vector<1x3xf32>
    %38 = arith.addf %36, %37 : vector<1x3xf32>
    %39 = math.rsqrt %38 : vector<1x3xf32>
    %cst_21 = arith.constant dense<0.000000e+00> : vector<1x192xf32>
    %40 = tpu.matmul %39, %22, %cst_21 {dimension_numbers = #tpu.dot_dimension_numbers<[1], [0], [0], [1], [0, 0, 1, 1], [], []>, precision = #tpu.contract_precision<fp32>} : vector<1x3xf32>, vector<3x192xf32>, vector<1x192xf32> -> vector<1x192xf32>
    %41 = vector.extract_strided_slice %0 {offsets = [1, 0], sizes = [1, 192], strides = [1, 1]} : vector<11x192xf32> to vector<1x192xf32>
    %42 = arith.mulf %40, %41 : vector<1x192xf32>
    %43 = vector.broadcast %42 : vector<1x192xf32> to vector<8x192xf32>
    %44 = arith.mulf %30, %43 : vector<8x192xf32>
    %45 = vector.extract_strided_slice %0 {offsets = [2, 0], sizes = [1, 192], strides = [1, 1]} : vector<11x192xf32> to vector<1x192xf32>
    %46 = vector.broadcast %45 : vector<1x192xf32> to vector<8x192xf32>
    %47 = arith.addf %44, %46 : vector<8x192xf32>
    %48 = arith.truncf %47 : vector<8x192xf32> to vector<8x192xbf16>
    %c0_22 = arith.constant 0 : index
    %c0_23 = arith.constant 0 : index
    %49 = vector.load %arg3[%c0_22, %c0_23] : memref<192x24xbf16, #tpu.memory_space<vmem>>, vector<192x24xbf16>
    %cst_24 = arith.constant dense<0.000000e+00> : vector<8x24xf32>
    %50 = tpu.matmul %48, %49, %cst_24 {dimension_numbers = #tpu.dot_dimension_numbers<[1], [0], [0], [1], [0, 0, 1, 1], [], []>} : vector<8x192xbf16>, vector<192x24xbf16>, vector<8x24xf32> -> vector<8x24xf32>
    %51 = vector.extract_strided_slice %0 {offsets = [4, 0], sizes = [1, 24], strides = [1, 1]} : vector<11x192xf32> to vector<1x24xf32>
    %52 = vector.broadcast %51 : vector<1x24xf32> to vector<8x24xf32>
    %53 = arith.addf %50, %52 : vector<8x24xf32>
    %54 = vector.extract_strided_slice %0 {offsets = [3, 0], sizes = [1, 192], strides = [1, 1]} : vector<11x192xf32> to vector<1x192xf32>
    %55 = arith.truncf %54 : vector<1x192xf32> to vector<1x192xbf16>
    %56 = vector.broadcast %55 : vector<1x192xbf16> to vector<8x192xbf16>
    %57 = arith.mulf %48, %56 : vector<8x192xbf16>
    %c0_25 = arith.constant 0 : index
    %c0_26 = arith.constant 0 : index
    %58 = vector.load %arg4[%c0_25, %c0_26] : memref<192x24xbf16, #tpu.memory_space<vmem>>, vector<192x24xbf16>
    %cst_27 = arith.constant dense<0.000000e+00> : vector<8x24xf32>
    %59 = tpu.matmul %57, %58, %cst_27 {dimension_numbers = #tpu.dot_dimension_numbers<[1], [0], [0], [1], [0, 0, 1, 1], [], []>} : vector<8x192xbf16>, vector<192x24xbf16>, vector<8x24xf32> -> vector<8x24xf32>
    %60 = vector.extract_strided_slice %0 {offsets = [5, 0], sizes = [1, 24], strides = [1, 1]} : vector<11x192xf32> to vector<1x24xf32>
    %61 = vector.broadcast %60 : vector<1x24xf32> to vector<8x24xf32>
    %62 = arith.addf %59, %61 : vector<8x24xf32>
    %cst_28 = arith.constant 5.000000e-01 : f32
    %63 = vector.broadcast %cst_28 : f32 to vector<8x24xf32>
    %64 = arith.mulf %63, %62 : vector<8x24xf32>
    %cst_29 = arith.constant 4.471500e-02 : f32
    %65 = vector.broadcast %cst_29 : f32 to vector<8x24xf32>
    %66 = arith.mulf %65, %62 : vector<8x24xf32>
    %67 = arith.mulf %66, %62 : vector<8x24xf32>
    %68 = arith.mulf %67, %62 : vector<8x24xf32>
    %69 = arith.addf %62, %68 : vector<8x24xf32>
    %cst_30 = arith.constant 0.797884583 : f32
    %70 = vector.broadcast %cst_30 : f32 to vector<8x24xf32>
    %71 = arith.mulf %70, %69 : vector<8x24xf32>
    %72 = math.tanh %71 : vector<8x24xf32>
    %cst_31 = arith.constant 1.000000e+00 : f32
    %73 = vector.broadcast %cst_31 : f32 to vector<8x24xf32>
    %74 = arith.addf %73, %72 : vector<8x24xf32>
    %75 = arith.mulf %64, %74 : vector<8x24xf32>
    %c0_32 = arith.constant 0 : index
    %c0_33 = arith.constant 0 : index
    %76 = vector.load %arg8[%c0_32, %c0_33] : memref<24x3xf32, #tpu.memory_space<vmem>>, vector<24x3xf32>
    %c0_34 = arith.constant 0 : index
    %c0_35 = arith.constant 0 : index
    %77 = vector.load %arg9[%c0_34, %c0_35] : memref<3x24xf32, #tpu.memory_space<vmem>>, vector<3x24xf32>
    %cst_36 = arith.constant dense<0.000000e+00> : vector<24xf32>
    %78 = vector.multi_reduction <add>, %75, %cst_36 [0] : vector<8x24xf32> to vector<24xf32>
    %79 = vector.shape_cast %78 : vector<24xf32> to vector<1x24xf32>
    %cst_37 = arith.constant dense<0.000000e+00> : vector<1x3xf32>
    %80 = tpu.matmul %79, %76, %cst_37 {dimension_numbers = #tpu.dot_dimension_numbers<[1], [0], [0], [1], [0, 0, 1, 1], [], []>, precision = #tpu.contract_precision<fp32>} : vector<1x24xf32>, vector<24x3xf32>, vector<1x3xf32> -> vector<1x3xf32>
    %cst_38 = arith.constant 1.562500e-02 : f32
    %81 = vector.broadcast %cst_38 : f32 to vector<1x3xf32>
    %82 = arith.mulf %80, %81 : vector<1x3xf32>
    %cst_39 = arith.constant dense<0.000000e+00> : vector<1x24xf32>
    %83 = tpu.matmul %82, %77, %cst_39 {dimension_numbers = #tpu.dot_dimension_numbers<[1], [0], [0], [1], [0, 0, 1, 1], [], []>, precision = #tpu.contract_precision<fp32>} : vector<1x3xf32>, vector<3x24xf32>, vector<1x24xf32> -> vector<1x24xf32>
    %84 = vector.broadcast %83 : vector<1x24xf32> to vector<8x24xf32>
    %85 = arith.subf %75, %84 : vector<8x24xf32>
    %86 = arith.mulf %85, %85 : vector<8x24xf32>
    %cst_40 = arith.constant dense<0.000000e+00> : vector<24xf32>
    %87 = vector.multi_reduction <add>, %86, %cst_40 [0] : vector<8x24xf32> to vector<24xf32>
    %88 = vector.shape_cast %87 : vector<24xf32> to vector<1x24xf32>
    %cst_41 = arith.constant dense<0.000000e+00> : vector<1x3xf32>
    %89 = tpu.matmul %88, %76, %cst_41 {dimension_numbers = #tpu.dot_dimension_numbers<[1], [0], [0], [1], [0, 0, 1, 1], [], []>, precision = #tpu.contract_precision<fp32>} : vector<1x24xf32>, vector<24x3xf32>, vector<1x3xf32> -> vector<1x3xf32>
    %cst_42 = arith.constant 1.562500e-02 : f32
    %90 = vector.broadcast %cst_42 : f32 to vector<1x3xf32>
    %91 = arith.mulf %89, %90 : vector<1x3xf32>
    %cst_43 = arith.constant 9.99999974E-6 : f32
    %92 = vector.broadcast %cst_43 : f32 to vector<1x3xf32>
    %93 = arith.addf %91, %92 : vector<1x3xf32>
    %94 = math.rsqrt %93 : vector<1x3xf32>
    %cst_44 = arith.constant dense<0.000000e+00> : vector<1x24xf32>
    %95 = tpu.matmul %94, %77, %cst_44 {dimension_numbers = #tpu.dot_dimension_numbers<[1], [0], [0], [1], [0, 0, 1, 1], [], []>, precision = #tpu.contract_precision<fp32>} : vector<1x3xf32>, vector<3x24xf32>, vector<1x24xf32> -> vector<1x24xf32>
    %96 = vector.extract_strided_slice %0 {offsets = [6, 0], sizes = [1, 24], strides = [1, 1]} : vector<11x192xf32> to vector<1x24xf32>
    %97 = arith.mulf %95, %96 : vector<1x24xf32>
    %98 = vector.broadcast %97 : vector<1x24xf32> to vector<8x24xf32>
    %99 = arith.mulf %85, %98 : vector<8x24xf32>
    %100 = vector.extract_strided_slice %0 {offsets = [7, 0], sizes = [1, 24], strides = [1, 1]} : vector<11x192xf32> to vector<1x24xf32>
    %101 = vector.broadcast %100 : vector<1x24xf32> to vector<8x24xf32>
    %102 = arith.addf %99, %101 : vector<8x24xf32>
    %103 = arith.addf %102, %53 : vector<8x24xf32>
    %104 = arith.truncf %103 : vector<8x24xf32> to vector<8x24xbf16>
    %c0_45 = arith.constant 0 : index
    %c0_46 = arith.constant 0 : index
    %105 = vector.load %arg5[%c0_45, %c0_46] : memref<24x24xbf16, #tpu.memory_space<vmem>>, vector<24x24xbf16>
    %cst_47 = arith.constant dense<0.000000e+00> : vector<8x24xf32>
    %106 = tpu.matmul %104, %105, %cst_47 {dimension_numbers = #tpu.dot_dimension_numbers<[1], [0], [0], [1], [0, 0, 1, 1], [], []>} : vector<8x24xbf16>, vector<24x24xbf16>, vector<8x24xf32> -> vector<8x24xf32>
    %107 = vector.extract_strided_slice %0 {offsets = [8, 0], sizes = [1, 24], strides = [1, 1]} : vector<11x192xf32> to vector<1x24xf32>
    %108 = vector.broadcast %107 : vector<1x24xf32> to vector<8x24xf32>
    %109 = arith.addf %106, %108 : vector<8x24xf32>
    %cst_48 = arith.constant 5.000000e-01 : f32
    %110 = vector.broadcast %cst_48 : f32 to vector<8x24xf32>
    %111 = arith.mulf %110, %109 : vector<8x24xf32>
    %cst_49 = arith.constant 4.471500e-02 : f32
    %112 = vector.broadcast %cst_49 : f32 to vector<8x24xf32>
    %113 = arith.mulf %112, %109 : vector<8x24xf32>
    %114 = arith.mulf %113, %109 : vector<8x24xf32>
    %115 = arith.mulf %114, %109 : vector<8x24xf32>
    %116 = arith.addf %109, %115 : vector<8x24xf32>
    %cst_50 = arith.constant 0.797884583 : f32
    %117 = vector.broadcast %cst_50 : f32 to vector<8x24xf32>
    %118 = arith.mulf %117, %116 : vector<8x24xf32>
    %119 = math.tanh %118 : vector<8x24xf32>
    %cst_51 = arith.constant 1.000000e+00 : f32
    %120 = vector.broadcast %cst_51 : f32 to vector<8x24xf32>
    %121 = arith.addf %120, %119 : vector<8x24xf32>
    %122 = arith.mulf %111, %121 : vector<8x24xf32>
    %c0_52 = arith.constant 0 : index
    %c0_53 = arith.constant 0 : index
    %123 = vector.load %arg8[%c0_52, %c0_53] : memref<24x3xf32, #tpu.memory_space<vmem>>, vector<24x3xf32>
    %c0_54 = arith.constant 0 : index
    %c0_55 = arith.constant 0 : index
    %124 = vector.load %arg9[%c0_54, %c0_55] : memref<3x24xf32, #tpu.memory_space<vmem>>, vector<3x24xf32>
    %cst_56 = arith.constant dense<0.000000e+00> : vector<24xf32>
    %125 = vector.multi_reduction <add>, %122, %cst_56 [0] : vector<8x24xf32> to vector<24xf32>
    %126 = vector.shape_cast %125 : vector<24xf32> to vector<1x24xf32>
    %cst_57 = arith.constant dense<0.000000e+00> : vector<1x3xf32>
    %127 = tpu.matmul %126, %123, %cst_57 {dimension_numbers = #tpu.dot_dimension_numbers<[1], [0], [0], [1], [0, 0, 1, 1], [], []>, precision = #tpu.contract_precision<fp32>} : vector<1x24xf32>, vector<24x3xf32>, vector<1x3xf32> -> vector<1x3xf32>
    %cst_58 = arith.constant 1.562500e-02 : f32
    %128 = vector.broadcast %cst_58 : f32 to vector<1x3xf32>
    %129 = arith.mulf %127, %128 : vector<1x3xf32>
    %cst_59 = arith.constant dense<0.000000e+00> : vector<1x24xf32>
    %130 = tpu.matmul %129, %124, %cst_59 {dimension_numbers = #tpu.dot_dimension_numbers<[1], [0], [0], [1], [0, 0, 1, 1], [], []>, precision = #tpu.contract_precision<fp32>} : vector<1x3xf32>, vector<3x24xf32>, vector<1x24xf32> -> vector<1x24xf32>
    %131 = vector.broadcast %130 : vector<1x24xf32> to vector<8x24xf32>
    %132 = arith.subf %122, %131 : vector<8x24xf32>
    %133 = arith.mulf %132, %132 : vector<8x24xf32>
    %cst_60 = arith.constant dense<0.000000e+00> : vector<24xf32>
    %134 = vector.multi_reduction <add>, %133, %cst_60 [0] : vector<8x24xf32> to vector<24xf32>
    %135 = vector.shape_cast %134 : vector<24xf32> to vector<1x24xf32>
    %cst_61 = arith.constant dense<0.000000e+00> : vector<1x3xf32>
    %136 = tpu.matmul %135, %123, %cst_61 {dimension_numbers = #tpu.dot_dimension_numbers<[1], [0], [0], [1], [0, 0, 1, 1], [], []>, precision = #tpu.contract_precision<fp32>} : vector<1x24xf32>, vector<24x3xf32>, vector<1x3xf32> -> vector<1x3xf32>
    %cst_62 = arith.constant 1.562500e-02 : f32
    %137 = vector.broadcast %cst_62 : f32 to vector<1x3xf32>
    %138 = arith.mulf %136, %137 : vector<1x3xf32>
    %cst_63 = arith.constant 9.99999974E-6 : f32
    %139 = vector.broadcast %cst_63 : f32 to vector<1x3xf32>
    %140 = arith.addf %138, %139 : vector<1x3xf32>
    %141 = math.rsqrt %140 : vector<1x3xf32>
    %cst_64 = arith.constant dense<0.000000e+00> : vector<1x24xf32>
    %142 = tpu.matmul %141, %124, %cst_64 {dimension_numbers = #tpu.dot_dimension_numbers<[1], [0], [0], [1], [0, 0, 1, 1], [], []>, precision = #tpu.contract_precision<fp32>} : vector<1x3xf32>, vector<3x24xf32>, vector<1x24xf32> -> vector<1x24xf32>
    %143 = vector.extract_strided_slice %0 {offsets = [9, 0], sizes = [1, 24], strides = [1, 1]} : vector<11x192xf32> to vector<1x24xf32>
    %144 = arith.mulf %142, %143 : vector<1x24xf32>
    %145 = vector.broadcast %144 : vector<1x24xf32> to vector<8x24xf32>
    %146 = arith.mulf %132, %145 : vector<8x24xf32>
    %147 = vector.extract_strided_slice %0 {offsets = [10, 0], sizes = [1, 24], strides = [1, 1]} : vector<11x192xf32> to vector<1x24xf32>
    %148 = vector.broadcast %147 : vector<1x24xf32> to vector<8x24xf32>
    %149 = arith.addf %146, %148 : vector<8x24xf32>
    %150 = arith.truncf %149 : vector<8x24xf32> to vector<8x24xbf16>
    %c0_65 = arith.constant 0 : index
    %c0_66 = arith.constant 0 : index
    %151 = vector.load %arg11[%c0_65, %c0_66] : memref<8x24xbf16, #tpu.memory_space<vmem>>, vector<8x24xbf16>
    tpu.vector_store %arg11[%c0_65, %c0_66], %150 {strides = array<i32>} : memref<8x24xbf16, #tpu.memory_space<vmem>>, vector<8x24xbf16>,
    return
  }
  func.func @transform_0(%arg0: i32) -> (i32, i32) {
    %c0_i32 = arith.constant 0 : i32
    %c0_i32_0 = arith.constant 0 : i32
    %c0_i32_1 = arith.constant 0 : i32
    return %c0_i32, %c0_i32_0 : i32, i32
  }
  func.func @transform_1(%arg0: i32) -> (i32, i32) {
    %c0_i32 = arith.constant 0 : i32
    %c0_i32_0 = arith.constant 0 : i32
    %c0_i32_1 = arith.constant 0 : i32
    return %c0_i32, %c0_i32_0 : i32, i32
  }
  func.func @transform_2(%arg0: i32) -> (i32, i32) {
    %c0_i32 = arith.constant 0 : i32
    %c0_i32_0 = arith.constant 0 : i32
    %c0_i32_1 = arith.constant 0 : i32
    return %c0_i32, %c0_i32_0 : i32, i32
  }
  func.func @transform_3(%arg0: i32) -> (i32, i32) {
    %c0_i32 = arith.constant 0 : i32
    %c0_i32_0 = arith.constant 0 : i32
    %c0_i32_1 = arith.constant 0 : i32
    return %c0_i32, %c0_i32_0 : i32, i32
  }
  func.func @transform_4(%arg0: i32) -> (i32, i32) {
    %c0_i32 = arith.constant 0 : i32
    %c0_i32_0 = arith.constant 0 : i32
    %c0_i32_1 = arith.constant 0 : i32
    return %c0_i32, %c0_i32_0 : i32, i32
  }
  func.func @transform_5(%arg0: i32) -> (i32, i32) {
    %c0_i32 = arith.constant 0 : i32
    %c0_i32_0 = arith.constant 0 : i32
    %c0_i32_1 = arith.constant 0 : i32
    return %c0_i32, %c0_i32_0 : i32, i32
  }
  func.func @transform_6(%arg0: i32) -> (i32, i32) {
    %c0_i32 = arith.constant 0 : i32
    %c0_i32_0 = arith.constant 0 : i32
    %c0_i32_1 = arith.constant 0 : i32
    return %c0_i32, %c0_i32_0 : i32, i32
  }
  func.func @transform_7(%arg0: i32) -> (i32, i32) {
    %c0_i32 = arith.constant 0 : i32
    %c0_i32_0 = arith.constant 0 : i32
    %c0_i32_1 = arith.constant 0 : i32
    return %c0_i32, %c0_i32_0 : i32, i32
  }
  func.func @transform_8(%arg0: i32) -> (i32, i32) {
    %c0_i32 = arith.constant 0 : i32
    %c0_i32_0 = arith.constant 0 : i32
    %c0_i32_1 = arith.constant 0 : i32
    return %c0_i32, %c0_i32_0 : i32, i32
  }
  func.func @transform_9(%arg0: i32) -> (i32, i32) {
    %c0_i32 = arith.constant 0 : i32
    %c0_i32_0 = arith.constant 0 : i32
    %c0_i32_1 = arith.constant 0 : i32
    return %c0_i32, %c0_i32_0 : i32, i32
  }
  func.func @transform_10(%arg0: i32) -> (i32, i32) {
    %c0_i32 = arith.constant 0 : i32
    %c0_i32_0 = arith.constant 0 : i32
    %c0_i32_1 = arith.constant 0 : i32
    return %c0_i32, %c0_i32_0 : i32, i32
  }
}

</mosaic_0001>

<bundles_post_ra>
// kernel: tpu_custom_call.1
= control target key start
LH: loop header
LB: loop body
LE: loop exit
PB: predicated region body
PF: predicated region fallthrough
CT: control target
= control target key end

     0   :  { %vm66_vm0 = vcmask 1043456   ;;  %s4954_s0 = inlined_call_operand.vmem [shape: f32[8,24], index: 0, kind: input, shape index: {}]   ;;  %s4955_s1 = inlined_call_operand.vmem [shape: bf16[24,192], index: 1, kind: input, shape index: {}]   ;;  %s4956_s2 = inlined_call_operand.vmem [shape: bf16[192,24], index: 2, kind: input, shape index: {}]   ;;  %s4957_s3 = inlined_call_operand.vmem [shape: bf16[192,24], index: 3, kind: input, shape index: {}]   ;;  %s4958_s4 = inlined_call_operand.vmem [shape: bf16[24,24], index: 4, kind: input, shape index: {}]   ;;  %s4959_s5 = inlined_call_operand.vmem [shape: f32[192,3], index: 5, kind: input, shape index: {}]   ;;  %s4960_s6 = inlined_call_operand.vmem [shape: f32[3,192], index: 6, kind: input, shape index: {}]   ;;  %s4961_s7 = inlined_call_operand.vmem [shape: f32[24,3], index: 7, kind: input, shape index: {}]   ;;  %s4962_s8 = inlined_call_operand.vmem [shape: f32[3,24], index: 8, kind: input, shape index: {}]   ;;  %s4963_s9 = inlined_call_operand.vmem [shape: f32[11,192], index: 9, kind: input, shape index: {}]   ;;  %s4964_s10 = inlined_call_operand.hbm [shape: bf16[8,24], index: 10, kind: output, shape index: {}]  }
   0x1   :  { %v44_v0 = vld [vmem:[%s4955_s1 + $0x10] sm:$0xff]  ;;  %v3707_v1 = vld [vmem:[%s4955_s1] sm:$0xf]  ;;  %v3819_v2 = vld [vmem:[%s4955_s1 + $0x4] sm:$0xf0] }
   0x2   :  { %v54_v3 = vunpack.c.l.b16 %v44_v0  ;;  %v55_v4 = vunpack.c.h.b16 %v44_v0  ;;  %v3818_v5 = vld [vmem:[%s4955_s1 + $0x4] sm:$0xf]  ;;  %v3709_v6 = vld [vmem:[%s4955_s1 + $0x8] sm:$0xf0]  ;;  %v3708_v7 = vor.u32 %v3819_v2, %v3707_v1  ;;  %v132_v9 = vld [vmem:[%s4959_s5 + $0x78] sm:$0xff] }
   0x3   :  { %v3712_v8 = vor.u32 %v3818_v5, %v3709_v6  ;;  %v131_v10 = vld [vmem:[%s4959_s5 + $0x70] sm:$0xff]  ;;  %v130_v11 = vld [vmem:[%s4959_s5 + $0x68] sm:$0xff]  ;;  %v3968_v14 = vand.u32 4294901760, %v132_v9  ;;  %v129_v16 = vld [vmem:[%s4959_s5 + $0x60] sm:$0xff] }
   0x4   :  { %v58_v12 = vpack.c.b16 %v54_v3, %v54_v3  ;;  %v59_v13 = vpack.c.b16 %v55_v4, %v55_v4  ;;  %v3970_v15 = vand.u32 4294901760, %v131_v10  ;;  %v128_v17 = vld [vmem:[%s4959_s5 + $0x58] sm:$0xff]  ;;  %v127_v18 = vld [vmem:[%s4959_s5 + $0x50] sm:$0xff]  ;;  %v3981_v19 = vand.u32 4294901760, %v130_v11  ;;  %v126_v23 = vld [vmem:[%s4959_s5 + $0x48] sm:$0xff] }
   0x5   :  { %v3983_v20 = vand.u32 4294901760, %v129_v16  ;;  %v3985_v21 = vand.u32 4294901760, %v128_v17  ;;  %v3987_v22 = vand.u32 4294901760, %v127_v18  ;;  %v3995_v26 = vsub.f32 %v132_v9, %v3968_v14  ;;  %160 = vmatpush.msra.mxu2 %v3968_v14  ;;  %v125_v28 = vld [vmem:[%s4959_s5 + $0x40] sm:$0xff] }
   0x6   :  { %v68_v24 = vsel %vm66_vm0, %v58_v12, 0  ;;  %v71_v25 = vsel %vm66_vm0, %v59_v13, 0  ;;  %v3998_v27 = vsub.f32 %v131_v10, %v3970_v15  ;;  %v40_v29 = vld [vmem:[%s4954_s0] sm:$0xff]  ;;  %v4008_v30 = vsub.f32 %v130_v11, %v3981_v19 }
   0x7   :  { %5029 = vst [vmem:[#allocation5_spill] sm:$0xff] %v3995_v26  ;;  %79 = vmatpush.bf16.msra.mxu0 %v68_v24  ;;  %92 = vmatpush.bf16.msra.mxu1 %v71_v25  ;;  %v4011_v31 = vsub.f32 %v129_v16, %v3983_v20  ;;  %v4014_v32 = vsub.f32 %v128_v17, %v3985_v21  ;;  %v4016_v33 = vand.u32 4294901760, %v126_v23 }
   0x8   :  { %5030 = vst [vmem:[#allocation6_spill] sm:$0xff] %v3998_v27 }
   0x9   :  { %5031 = vst [vmem:[#allocation7_spill] sm:$0xff] %v4008_v30 }
   0xa   :  { %5032 = vst [vmem:[#allocation8_spill] sm:$0xff] %v4011_v31 }
   0xb   :  { %5033 = vst [vmem:[#allocation9_spill] sm:$0xff] %v4014_v32 }
   0xc   :  { %15 = vsyncpa [#allocation3], 0  ;;  %v4019_v34 = vand.u32 4294901760, %v3995_v26  ;;  %v4022_v35 = vand.u32 4294901760, %v3998_v27  ;;  %162 = vmatpush.msra.mxu2 %v3970_v15  ;;  %v4026_v36 = vsub.f32 %v127_v18, %v3987_v22  ;;  %v4029_v37 = vand.u32 4294901760, %v4008_v30  ;;  %80 = vmatpush.bf16.msra.mxu0 %v3708_v7  ;;  %v124_v46 = vld [vmem:[%s4959_s5 + $0x38] sm:$0xff] }
   0xd   :  { %v4032_v38 = vand.u32 4294901760, %v4011_v31  ;;  %v4034_v39 = vand.u32 4294901760, %v125_v28  ;;  %v41_v40 = vpack.c.bf16 %v40_v29, %v40_v29  ;;  %93 = vmatpush.bf16.msra.mxu1 %v3712_v8  ;;  %vm62_vm1 = vcmask 195584   ;;  %v123_v47 = vld [vmem:[%s4959_s5 + $0x30] sm:$0xff]  ;;  %v122_v50 = vld [vmem:[%s4959_s5 + $0x28] sm:$0xff]  ;;  %v121_v56 = vld [vmem:[%s4959_s5 + $0x20] sm:$0xff] }
   0xe   :  { %5034 = vst [vmem:[#allocation10_spill] sm:$0xff] %v4019_v34  ;;  %v203_v41 = vsub.f32 %v3995_v26, %v4019_v34  ;;  %v209_v42 = vsub.f32 %v3998_v27, %v4022_v35  ;;  %164 = vmatpush.msra.mxu2 %v3981_v19  ;;  %v215_v43 = vsub.f32 %v4008_v30, %v4029_v37  ;;  %v4044_v44 = vand.u32 4294901760, %v4014_v32  ;;  %s3696_s27 = sshll.u32 %s4964_s10, 4  ;;  %s3697_s27 = int_to_ptr.hbm [resolvable:$true] %s3696_s27 }
   0xf   :  { %5035 = vst [vmem:[#allocation11_spill] sm:$0xff] %v4022_v35  ;;  %v4047_v45 = vsub.f32 %v126_v23, %v4016_v33  ;;  %v4058_v49 = vand.u32 4294901760, %v4026_v36  ;;  %v221_v52 = vsub.f32 %v4011_v31, %v4032_v38  ;;  %v4070_v53 = vsub.f32 %v125_v28, %v4034_v39  ;;  %3713 = vmatmul.msk.bf16.vlgmr.msra.gmra.mxu0 %vm62_vm1, %v41_v40 }
  0x10   :  { %5036 = vst [vmem:[#allocation12_spill] sm:$0xff] %v4026_v36  ;;  %v4055_v48 = vand.u32 4294901760, %v203_v41  ;;  %166 = vmatpush.msra.mxu2 %v3983_v20  ;;  %303 = vmatpush.msrb.mxu0 %v3995_v26  ;;  %v4065_v51 = vand.u32 4294901760, %v209_v42  ;;  %v4075_v54 = vand.u32 4294901760, %v124_v46  ;;  %v4077_v55 = vand.u32 4294901760, %v123_v47  ;;  %v120_v41 = vld [vmem:[%s4959_s5 + $0x18] sm:$0xff] }
  0x11   :  { %5037 = vst [vmem:[#allocation13_spill] sm:$0xff] %v4029_v37  ;;  %356 = vmatpush.msrb.mxu1 %v3968_v14  ;;  %v4083_v57 = vand.u32 4294901760, %v215_v43  ;;  %v227_v58 = vsub.f32 %v4014_v32, %v4044_v44  ;;  %v4088_v59 = vand.u32 4294901760, %v4047_v45  ;;  %v4091_v60 = vand.u32 4294901760, %v122_v50  ;;  %v119_v43 = vld [vmem:[%s4959_s5 + $0x10] sm:$0xff] }
  0x12   :  { %5038 = vst [vmem:[#allocation14_spill] sm:$0xff] %v4032_v38  ;;  %3714 = vmatmul.msk.bf16.vlgmr.msra.gmra.mxu1 %vm62_vm1, %v41_v40  ;;  %205 = vmatpush.msra.mxu3 %v4055_v48  ;;  %v233_v61 = vsub.f32 %v4026_v36, %v4058_v49  ;;  %v4096_v62 = vsub.f32 %v124_v46, %v4075_v54  ;;  %v4101_v63 = vand.u32 4294901760, %v221_v52  ;;  %v4104_v0 = vand.u32 4294901760, %v4070_v53 }
  0x13   :  { %5039 = vst [vmem:[#allocation15_spill] sm:$0xff] %v4044_v44  ;;  %168 = vmatpush.msra.mxu2 %v3985_v21  ;;  %306 = vmatpush.msrb.mxu0 %v3998_v27  ;;  %v4108_v1 = vsub.f32 %v123_v47, %v4077_v55  ;;  %v4110_v2 = vand.u32 4294901760, %v121_v56  ;;  %v4115_v3 = vand.u32 4294901760, %v227_v58  ;;  %v239_v4 = vsub.f32 %v4047_v45, %v4088_v59 }
  0x14   :  { %5040 = vst [vmem:[#allocation16_spill] sm:$0xff] %v4047_v45  ;;  %358 = vmatpush.msrb.mxu1 %v3970_v15  ;;  %211 = vmatpush.msra.mxu3 %v4065_v51  ;;  %v4120_v5 = vand.u32 4294901760, %v4096_v62  ;;  %v4124_v6 = vsub.f32 %v122_v50, %v4091_v60  ;;  %v4129_v7 = vand.u32 4294901760, %v233_v61  ;;  %v245_v8 = vsub.f32 %v4070_v53, %v4104_v0  ;;  %v118_v50 = vld [vmem:[%s4959_s5 + $0x8] sm:$0xff]  ;;  %v117_v61 = vld [vmem:[%s4959_s5] sm:$0xff] }
  0x15   :  { %5041 = vst [vmem:[#allocation17_spill] sm:$0xff] %v4058_v49  ;;  %170 = vmatpush.msra.mxu2 %v3987_v22  ;;  %309 = vmatpush.msrb.mxu0 %v4008_v30  ;;  %v4134_v9 = vand.u32 4294901760, %v4108_v1  ;;  %v4138_v10 = vsub.f32 %v121_v56, %v4110_v2  ;;  %v4143_v11 = vand.u32 4294901760, %v239_v4  ;;  %v4197_v42 = vand.u32 4294901760, %v120_v41 }
  0x16   :  { %5042 = vst [vmem:[#allocation18_spill] sm:$0xff] %v4070_v53  ;;  %360 = vmatpush.msrb.mxu1 %v3981_v19  ;;  %217 = vmatpush.msra.mxu3 %v4083_v57  ;;  %v251_v12 = vsub.f32 %v4096_v62, %v4120_v5  ;;  %v4148_v13 = vand.u32 4294901760, %v4124_v6  ;;  %v4154_v16 = vand.u32 4294901760, %v245_v8  ;;  %v4205_v47 = vand.u32 4294901760, %v119_v43 }
  0x17   :  { %5043 = vst [vmem:[#allocation19_spill] sm:$0xff] %v4088_v59  ;;  %172 = vmatpush.msra.mxu2 %v4016_v33  ;;  %312 = vmatpush.msrb.mxu0 %v4011_v31  ;;  %v257_v17 = vsub.f32 %v4108_v1, %v4134_v9  ;;  %v4159_v18 = vand.u32 4294901760, %v4138_v10  ;;  %v4203_v46 = vsub.f32 %v120_v41, %v4197_v42  ;;  %v4218_v58 = vand.u32 4294901760, %v118_v50 }
  0x18   :  { %5044 = vst [vmem:[#allocation20_spill] sm:$0xff] %v4091_v60  ;;  %362 = vmatpush.msrb.mxu1 %v3983_v20  ;;  %223 = vmatpush.msra.mxu3 %v4101_v63  ;;  %v4165_v23 = vand.u32 4294901760, %v251_v12  ;;  %v263_v24 = vsub.f32 %v4124_v6, %v4148_v13  ;;  %v4216_v56 = vsub.f32 %v119_v43, %v4205_v47  ;;  %vm148_vm2 = vcmask 523264  }
  0x19   :  { %5045 = vst [vmem:[#allocation21_spill] sm:$0xff] %v4096_v62  ;;  %174 = vmatpush.msra.mxu2 %v4034_v39  ;;  %315 = vmatpush.msrb.mxu0 %v4014_v32  ;;  %v4173_v25 = vand.u32 4294901760, %v257_v17  ;;  %v269_v28 = vsub.f32 %v4138_v10, %v4159_v18  ;;  %v4213_v52 = vand.u32 4294901760, %v4203_v46  ;;  %v4232_v12 = vsub.f32 %v118_v50, %v4218_v58 }
  0x1a   :  { %5046 = vst [vmem:[#allocation22_spill] sm:$0xff] %v4104_v0  ;;  %364 = vmatpush.msrb.mxu1 %v3985_v21  ;;  %229 = vmatpush.msra.mxu3 %v4115_v3  ;;  %v4181_v29 = vand.u32 4294901760, %v263_v24  ;;  %v4229_v8 = vand.u32 4294901760, %v4216_v56  ;;  %v4234_v17 = vand.u32 4294901760, %v117_v61  ;;  %vm746_vm3 = vcmask 1042432  }
  0x1b   :  { %5047 = vst [vmem:[#allocation23_spill] sm:$0xff] %v4108_v1  ;;  %176 = vmatpush.msra.mxu2 %v4075_v54  ;;  %318 = vmatpush.msrb.mxu0 %v4026_v36  ;;  %v4186_v40 = vand.u32 4294901760, %v269_v28  ;;  %v275_v4 = vsub.f32 %v4203_v46, %v4213_v52  ;;  %v4244_v41 = vand.u32 4294901760, %v4232_v12  ;;  %vm742_vm4 = vcmask 23552  }
  0x1c   :  { %5048 = vst [vmem:[#allocation24_spill] sm:$0xff] %v4110_v2  ;;  %366 = vmatpush.msrb.mxu1 %v3987_v22  ;;  %235 = vmatpush.msra.mxu3 %v4129_v7  ;;  %v281_v28 = vsub.f32 %v4216_v56, %v4229_v8  ;;  %v4247_v43 = vsub.f32 %v117_v61, %v4234_v17  ;;  %vm3687_vm14 = vcmask 191488  }
  0x1d   :  { %5049 = vst [vmem:[#allocation25_spill] sm:$0xff] %v4120_v5  ;;  %178 = vmatpush.msra.mxu2 %v4077_v55  ;;  %321 = vmatpush.msrb.mxu0 %v4047_v45  ;;  %v4239_v24 = vand.u32 4294901760, %v275_v4  ;;  %v287_v4 = vsub.f32 %v4232_v12, %v4244_v41 }
  0x1e   :  { %5050 = vst [vmem:[#allocation26_spill] sm:$0xff] %v4124_v6  ;;  %368 = vmatpush.msrb.mxu1 %v4016_v33  ;;  %241 = vmatpush.msra.mxu3 %v4143_v11  ;;  %v4254_v50 = vand.u32 4294901760, %v281_v28 }
  0x1f   :  { %5051 = vst [vmem:[#allocation27_spill] sm:$0xff] %v4134_v9  ;;  %180 = vmatpush.msra.mxu2 %v4091_v60  ;;  %324 = vmatpush.msrb.mxu0 %v4070_v53  ;;  %v4264_v61 = vand.u32 4294901760, %v287_v4 }
  0x20   :  { %5052 = vst [vmem:[#allocation28_spill] sm:$0xff] %v4138_v10  ;;  %370 = vmatpush.msrb.mxu1 %v4034_v39  ;;  %247 = vmatpush.msra.mxu3 %v4154_v16 }
  0x21   :  { %5053 = vst [vmem:[#allocation29_spill] sm:$0xff] %v4148_v13  ;;  %182 = vmatpush.msra.mxu2 %v4110_v2  ;;  %327 = vmatpush.msrb.mxu0 %v4096_v62 }
  0x22   :  { %5054 = vst [vmem:[#allocation30_spill] sm:$0xff] %v4159_v18  ;;  %372 = vmatpush.msrb.mxu1 %v4075_v54  ;;  %253 = vmatpush.msra.mxu3 %v4165_v23 }
  0x23   :  { %330 = vmatpush.msrb.mxu0 %v4108_v1  ;;  %5055 = vst [vmem:[#allocation31_spill] sm:$0xff] %v4186_v40  ;;  %184 = vmatpush.msra.mxu2 %v4197_v42 }
  0x24   :  { %374 = vmatpush.msrb.mxu1 %v4077_v55  ;;  %259 = vmatpush.msra.mxu3 %v4173_v25  ;;  %5056 = vst [vmem:[#allocation32_spill] sm:$0xff] %v4197_v42 }
  0x25   :  { %333 = vmatpush.msrb.mxu0 %v4124_v6  ;;  %5057 = vst [vmem:[#allocation33_spill] sm:$0xff] %v4203_v46  ;;  %186 = vmatpush.msra.mxu2 %v4205_v47  ;;  %v38_v6 = vld [vmem:[%s4963_s9 + $0x8] sm:$0xff] }
  0x26   :  { %376 = vmatpush.msrb.mxu1 %v4091_v60  ;;  %265 = vmatpush.msra.mxu3 %v4181_v29  ;;  %5058 = vst [vmem:[#allocation34_spill] sm:$0xff] %v4205_v47  ;;  %v46_v45 = vperm.slane %v38_v6, 0 }
  0x27   :  { %336 = vmatpush.msrb.mxu0 %v4138_v10  ;;  %5059 = vst [vmem:[#allocation35_spill] sm:$0xff] %v4213_v52  ;;  %188 = vmatpush.msra.mxu2 %v4218_v58 }
  0x28   :  { %378 = vmatpush.msrb.mxu1 %v4110_v2  ;;  %271 = vmatpush.msra.mxu3 %v4186_v40  ;;  %5060 = vst [vmem:[#allocation36_spill] sm:$0xff] %v4216_v56 }
  0x29   :  { %5061 = vst [vmem:[#allocation37_spill] sm:$0xff] %v4218_v58  ;;  %339 = vmatpush.msrb.mxu0 %v4203_v46  ;;  %190 = vmatpush.msra.mxu2 %v4234_v17 }
  0x2a   :  { %380 = vmatpush.msrb.mxu1 %v4197_v42  ;;  %5062 = vst [vmem:[#allocation38_spill] sm:$0xff] %v4229_v8  ;;  %277 = vmatpush.msra.mxu3 %v4239_v24 }
  0x2b   :  { %5063 = vst [vmem:[#allocation39_spill] sm:$0xff] %v4232_v12  ;;  %342 = vmatpush.msrb.mxu0 %v4216_v56  ;;  %397 = vmatpush.msrb.mxu2 %v4019_v34  ;;  %v4259_v56 = vand.u32 4294901760, %v4247_v43 }
  0x2c   :  { %382 = vmatpush.msrb.mxu1 %v4205_v47  ;;  %5064 = vst [vmem:[#allocation40_spill] sm:$0xff] %v4234_v17  ;;  %283 = vmatpush.msra.mxu3 %v4254_v50 }
  0x2d   :  { %5065 = vst [vmem:[#allocation41_spill] sm:$0xff] %v4239_v24  ;;  %345 = vmatpush.msrb.mxu0 %v4232_v12  ;;  %401 = vmatpush.msrb.mxu2 %v4022_v35  ;;  %v293_v46 = vsub.f32 %v4247_v43, %v4259_v56 }
  0x2e   :  { %384 = vmatpush.msrb.mxu1 %v4218_v58  ;;  %5066 = vst [vmem:[#allocation42_spill] sm:$0xff] %v4244_v41  ;;  %289 = vmatpush.msra.mxu3 %v4264_v61 }
  0x2f   :  { %5067 = vst [vmem:[#allocation43_spill] sm:$0xff] %v4247_v43  ;;  %348 = vmatpush.msrb.mxu0 %v4247_v43  ;;  %405 = vmatpush.msrb.mxu2 %v4029_v37  ;;  %v4270_v28 = vand.u32 4294901760, %v293_v46  ;;  %v140_v46 = vld [vmem:[%s4959_s5 + $0xb8] sm:$0xff]  ;;  %v139_v43 = vld [vmem:[%s4959_s5 + $0xb0] sm:$0xff] }
  0x30   :  { %386 = vmatpush.msrb.mxu1 %v4234_v17  ;;  %5068 = vst [vmem:[#allocation44_spill] sm:$0xff] %v4254_v50  ;;  %v4288_v4 = vand.u32 4294901760, %v140_v46  ;;  %v4296_v12 = vand.u32 4294901760, %v139_v43 }
  0x31   :  { %5069 = vst [vmem:[#allocation45_spill] sm:$0xff] %v4259_v56  ;;  %409 = vmatpush.msrb.mxu2 %v4032_v38  ;;  %295 = vmatpush.msra.mxu3 %v4270_v28 }
  0x32   :  { %5070 = vst [vmem:[#allocation46_spill] sm:$0xff] %v4264_v61  ;;  %509 = vmatpush.msra.mxu0 %v4288_v4 }
  0x33   :  { %5071 = vst [vmem:[#allocation47_spill] sm:$0xff] %v4270_v28  ;;  %464 = vmatpush.msrb.mxu3 %v3968_v14  ;;  %413 = vmatpush.msrb.mxu2 %v4044_v44  ;;  %v136_v44 = vld [vmem:[%s4959_s5 + $0x98] sm:$0xff] }
  0x34   :  { %511 = vmatpush.msra.mxu0 %v4296_v12 }
  0x35   :  { %466 = vmatpush.msrb.mxu3 %v3970_v15  ;;  %417 = vmatpush.msrb.mxu2 %v4058_v49 }
  0x37   :  { %468 = vmatpush.msrb.mxu3 %v3981_v19  ;;  %421 = vmatpush.msrb.mxu2 %v4088_v59  ;;  %v4313_v59 = vsub.f32 %v139_v43, %v4296_v12 }
  0x39   :  { %470 = vmatpush.msrb.mxu3 %v3983_v20  ;;  %425 = vmatpush.msrb.mxu2 %v4104_v0  ;;  %v138_v0 = vld [vmem:[%s4959_s5 + $0xa8] sm:$0xff]  ;;  %v4330_v49 = vand.u32 4294901760, %v4313_v59 }
  0x3a   :  { %v4310_v10 = vand.u32 4294901760, %v138_v0 }
  0x3b   :  { %472 = vmatpush.msrb.mxu3 %v3985_v21  ;;  %429 = vmatpush.msrb.mxu2 %v4120_v5  ;;  %v4299_v5 = vsub.f32 %v140_v46, %v4288_v4  ;;  %v137_v46 = vld [vmem:[%s4959_s5 + $0xa0] sm:$0xff]  ;;  %v550_v38 = vsub.f32 %v4313_v59, %v4330_v49 }
  0x3c   :  { %513 = vmatpush.msra.mxu0 %v4310_v10  ;;  %v4332_v1 = vand.u32 4294901760, %v137_v46 }
  0x3d   :  { %474 = vmatpush.msrb.mxu3 %v3987_v22  ;;  %433 = vmatpush.msrb.mxu2 %v4134_v9  ;;  %v4308_v9 = vand.u32 4294901760, %v4299_v5 }
  0x3e   :  { %515 = vmatpush.msra.mxu0 %v4332_v1  ;;  %v4353_v35 = vsub.f32 %v137_v46, %v4332_v1 }
  0x3f   :  { %476 = vmatpush.msrb.mxu3 %v4016_v33  ;;  %437 = vmatpush.msrb.mxu2 %v4148_v13  ;;  %v37_v13 = vld [vmem:[%s4963_s9] sm:$0xff]  ;;  %v544_v43 = vsub.f32 %v4299_v5, %v4308_v9 }
  0x40   :  { %v45_v37 = vperm.slane %v37_v13, 0  ;;  %v4372_v46 = vand.u32 4294901760, %v4353_v35 }
  0x41   :  { %478 = vmatpush.msrb.mxu3 %v4034_v39  ;;  %441 = vmatpush.msrb.mxu2 %v4159_v18  ;;  %v4335_v18 = vsub.f32 %v138_v0, %v4310_v10  ;;  %v4342_v62 = vand.u32 4294901760, %v544_v43  ;;  %v4350_v0 = vand.u32 4294901760, %v136_v44  ;;  %v135_v43 = vld [vmem:[%s4959_s5 + $0x90] sm:$0xff] }
  0x42   :  { %v4365_v13 = vand.u32 4294901760, %v135_v43  ;;  %v562_v31 = vsub.f32 %v4353_v35, %v4372_v46 }
  0x43   :  { %480 = vmatpush.msrb.mxu3 %v4075_v54  ;;  %445 = vmatpush.msrb.mxu2 %v4213_v52  ;;  %5072 = vst [vmem:[#allocation48_spill] sm:$0xff] %v4342_v62  ;;  %v4348_v53 = vand.u32 4294901760, %v4335_v18  ;;  %v4361_v52 = vand.u32 4294901760, %v550_v38  ;;  %v4368_v6 = vsub.f32 %v136_v44, %v4350_v0 }
  0x44   :  { %546 = vmatpush.msra.mxu1 %v4342_v62  ;;  %517 = vmatpush.msra.mxu0 %v4350_v0  ;;  %v4388_v34 = vsub.f32 %v135_v43, %v4365_v13  ;;  %v4404_v50 = vand.u32 4294901760, %v562_v31 }
  0x45   :  { %482 = vmatpush.msrb.mxu3 %v4077_v55  ;;  %449 = vmatpush.msrb.mxu2 %v4229_v8  ;;  %5073 = vst [vmem:[#allocation49_spill] sm:$0xff] %v4361_v52  ;;  %v556_v36 = vsub.f32 %v4335_v18, %v4348_v53  ;;  %v134_v8 = vld [vmem:[%s4959_s5 + $0x88] sm:$0xff]  ;;  %v4383_v44 = vand.u32 4294901760, %v4368_v6 }
  0x46   :  { %552 = vmatpush.msra.mxu1 %v4361_v52  ;;  %v4385_v62 = vand.u32 4294901760, %v134_v8  ;;  %5075 = vst [vmem:[#allocation51_spill] sm:$0xff] %v4388_v34  ;;  %519 = vmatpush.msra.mxu0 %v4365_v13  ;;  %v4402_v61 = vand.u32 4294901760, %v4388_v34 }
  0x47   :  { %484 = vmatpush.msrb.mxu3 %v4091_v60  ;;  %453 = vmatpush.msrb.mxu2 %v4244_v41  ;;  %v4380_v38 = vand.u32 4294901760, %v556_v36  ;;  %v133_v36 = vld [vmem:[%s4959_s5 + $0x80] sm:$0xff]  ;;  %v568_v43 = vsub.f32 %v4368_v6, %v4383_v44  ;;  %5077 = vst [vmem:[#allocation53_spill] sm:$0xff] %v4404_v50 }
  0x48   :  { %5076 = vst [vmem:[#allocation52_spill] sm:$0xff] %v4402_v61  ;;  %521 = vmatpush.msra.mxu0 %v4385_v62  ;;  %v4407_v30 = vand.u32 4294901760, %v133_v36 }
  0x49   :  { %486 = vmatpush.msrb.mxu3 %v4110_v2  ;;  %5074 = vst [vmem:[#allocation50_spill] sm:$0xff] %v4380_v38  ;;  %457 = vmatpush.msrb.mxu2 %v4259_v56  ;;  %v4410_v56 = vsub.f32 %v134_v8, %v4385_v62 }
  0x4a   :  { %558 = vmatpush.msra.mxu1 %v4380_v38  ;;  %523 = vmatpush.msra.mxu0 %v4407_v30  ;;  %v4424_v8 = vsub.f32 %v133_v36, %v4407_v30 }
  0x4b   :  { %488 = vmatpush.msrb.mxu3 %v4197_v42  ;;  %5078 = vst [vmem:[#allocation54_spill] sm:$0xff] %v4410_v56  ;;  %v4420_v31 = vand.u32 4294901760, %v4410_v56 }
  0x4c   :  { %564 = vmatpush.msra.mxu1 %v4404_v50  ;;  %5081 = vst [vmem:[#allocation57_spill] sm:$0xff] %v4424_v8  ;;  %v4433_v24 = vand.u32 4294901760, %v4424_v8 }
  0x4d   :  { %490 = vmatpush.msrb.mxu3 %v4205_v47  ;;  %5080 = vst [vmem:[#allocation56_spill] sm:$0xff] %v4420_v31 }
  0x4e   :  { %5083 = vst [vmem:[#allocation59_spill] sm:$0xff] %v4433_v24 }
  0x4f   :  { %492 = vmatpush.msrb.mxu3 %v4218_v58 }
  0x51   :  { %494 = vmatpush.msrb.mxu3 %v4234_v17 }
  0x8c   :  { %v82_v32 = vpop.f32.mrf.mxu0 }
  0x8d   :  { %v83_v41 = vadd.f32 %v82_v32, %v45_v37 }
  0x8f   :  { %v95_v28 = vpop.f32.mrf.mxu1  ;;  %v101_v32 = vmul.f32 0.044715, %v83_v41 }
  0x90   :  { %v96_v52 = vadd.f32 %v95_v28, %v46_v45  ;;  %v4414_v45 = vand.u32 4294901760, %v568_v43  ;;  %v574_v28 = vsub.f32 %v4388_v34, %v4402_v61  ;;  %v580_v43 = vsub.f32 %v4410_v56, %v4420_v31 }
  0x91   :  { %v103_v38 = vmul.f32 %v101_v32, %v83_v41 }
  0x92   :  { %v102_v37 = vmul.f32 0.044715, %v96_v52  ;;  %5079 = vst [vmem:[#allocation55_spill] sm:$0xff] %v4414_v45  ;;  %570 = vmatpush.msra.mxu1 %v4414_v45  ;;  %v4427_v50 = vand.u32 4294901760, %v574_v28  ;;  %v4436_v36 = vand.u32 4294901760, %v580_v43  ;;  %v586_v28 = vsub.f32 %v4424_v8, %v4433_v24 }
  0x93   :  { %v105_v47 = vmul.f32 %v103_v38, %v83_v41  ;;  %v100_v17 = vmul.f32 0.5, %v96_v52 }
  0x94   :  { %v104_v42 = vmul.f32 %v102_v37, %v96_v52  ;;  %5082 = vst [vmem:[#allocation58_spill] sm:$0xff] %v4427_v50  ;;  %v84_v32 = vpop.f32.mrf.mxu0  ;;  %576 = vmatpush.msra.mxu1 %v4427_v50  ;;  %v4441_v27 = vand.u32 4294901760, %v586_v28  ;;  %v99_v50 = vmul.f32 0.5, %v83_v41 }
  0x95   :  { %5084 = vst [vmem:[#allocation60_spill] sm:$0xff] %v4436_v36  ;;  %v107_v58 = vadd.f32 %v105_v47, %v83_v41 }
  0x96   :  { %v106_v2 = vmul.f32 %v104_v42, %v96_v52  ;;  %582 = vmatpush.msra.mxu1 %v4436_v36  ;;  %5085 = vst [vmem:[#allocation61_spill] sm:$0xff] %v4441_v27 }
  0x97   :  { %v97_v37 = vpop.f32.mrf.mxu1  ;;  %v109_v38 = vmul.f32 0.7978846, %v107_v58 }
  0x98   :  { %v108_v45 = vadd.f32 %v106_v2, %v96_v52  ;;  %588 = vmatpush.msra.mxu1 %v4441_v27 }
  0x99   :  { %3846 = vtanh.f32 %v109_v38 }
  0x9a   :  { %v110_v42 = vmul.f32 0.7978846, %v108_v45 }
  0x9c   :  { %3848 = vtanh.f32 %v110_v42 }
  0x9f   :  { %v3847_v32 = vpop.eup %3846 }
  0xa0   :  { %v113_v43 = vadd.f32 1.0, %v3847_v32 }
  0xa2   :  { %v3849_v37 = vpop.eup %3848  ;;  %v4444_v2 = vmul.f32 %v113_v43, %v99_v50 }
  0xa3   :  { %v114_v47 = vadd.f32 1.0, %v3849_v37 }
  0xa4   :  { %v142_v58 = vrot.slane %v4444_v2, 4 }
  0xa5   :  { %v4446_v60 = vmul.f32 %v114_v47, %v100_v17 }
  0xa6   :  { %v143_v38 = vadd.f32 %v142_v58, %v4444_v2 }
  0xa7   :  { %5086 = vst [vmem:[#allocation62_spill] sm:$0xff] %v4446_v60  ;;  %v149_v45 = vsel %vm148_vm2, %v4446_v60, 0.0 }
  0xa8   :  { %v150_v28 = vrot.slane %v149_v45, 4  ;;  %v144_v27 = vrot.slane %v143_v38, 2 }
  0xaa   :  { %v151_v42 = vadd.f32 %v150_v28, %v149_v45  ;;  %v145_v36 = vadd.f32 %v144_v27, %v143_v38  ;;  %v141_v28 = vld [vmem:[%s4960_s6] sm:$0x77] }
  0xab   :  { %739 = vst [vmem:[#allocation1] ss:$2 sm:$0xff] %v141_v28 }
  0xac   :  { %v152_v41 = vrot.slane %v151_v42, 2  ;;  %v146_v32 = vrot.slane %v145_v36, 1 }
  0xae   :  { %v153_v52 = vadd.f32 %v152_v41, %v151_v42  ;;  %v147_v37 = vadd.f32 %v146_v32, %v145_v36 }
  0xb0   :  { %v154_v50 = vrot.slane %v153_v52, 1  ;;  %v191_v43 = vand.u32 4294901760, %v147_v37 }
  0xb2   :  { %v155_v40 = vadd.f32 %v154_v50, %v153_v52  ;;  %297 = vmatmul.f32.vlgmr.msra.gmra.mxu3 %v191_v43  ;;  %v192_v17 = vsub.f32 %v147_v37, %v191_v43  ;;  %v740_v38 = vld.sshfl [vmem:[#allocation1] sm:$0xff pattern:$0x75316420] }
  0xb3   :  { %717 = vmatpush.msra.mxu3 %v4288_v4  ;;  %v747_v42 = vsel %vm746_vm3, %v740_v38, 0 }
  0xb4   :  { %v157_v47 = vsel %vm148_vm2, %v155_v40, 0  ;;  %351 = vmatmul.f32.vlgmr.msrb.gmra.mxu0 %v192_v17  ;;  %v193_v26 = vand.u32 4294901760, %v192_v17  ;;  %v766_v41 = vand.u32 4294901760, %v747_v42 }
  0xb5   :  { %v524_v60 = vand.u32 4294901760, %v157_v47  ;;  %604 = vmatpush.msrb.mxu0 %v4299_v5  ;;  %719 = vmatpush.msra.mxu3 %v4296_v12 }
  0xb6   :  { %390 = vmatmul.f32.vlgmr.msrb.gmra.mxu1 %v193_v26  ;;  %v194_v58 = vsub.f32 %v192_v17, %v193_v26  ;;  %v793_v32 = vsub.f32 %v747_v42, %v766_v41 }
  0xb7   :  { %v525_v27 = vsub.f32 %v157_v47, %v524_v60  ;;  %607 = vmatpush.msrb.mxu0 %v4313_v59  ;;  %641 = vmatpush.msrb.mxu1 %v4288_v4 }
  0xb8   :  { %721 = vmatpush.msra.mxu3 %v4310_v10  ;;  %v195_v40 = vand.u32 4294901760, %v194_v58  ;;  %v794_v52 = vand.u32 4294901760, %v793_v32  ;;  %v741_v58 = vld.sshfl [vmem:[#allocation1 + $0x8] sm:$0xff pattern:$0x75316420] }
  0xb9   :  { %v526_v36 = vand.u32 4294901760, %v525_v27  ;;  %610 = vmatpush.msrb.mxu0 %v4335_v18  ;;  %643 = vmatpush.msrb.mxu1 %v4296_v12  ;;  %1655 = vst [vmem:[#allocation1] ss:$2 sm:$0xff] %v141_v28 }
  0xba   :  { %723 = vmatpush.msra.mxu3 %v4332_v1  ;;  %196 = vmatmul.f32.vlgmr.msra.gmra.mxu2 %v195_v40  ;;  %v795_v37 = vsub.f32 %v793_v32, %v794_v52 }
  0xbb   :  { %v527_v45 = vsub.f32 %v525_v27, %v526_v36  ;;  %496 = vmatmul.f32.vlgmr.msrb.gmra.mxu3 %v191_v43  ;;  %613 = vmatpush.msrb.mxu0 %v4353_v35 }
  0xbc   :  { %645 = vmatpush.msrb.mxu1 %v4310_v10  ;;  %674 = vmatpush.msra.mxu2 %v4308_v9 }
  0xbd   :  { %v528_v26 = vand.u32 4294901760, %v527_v45  ;;  %725 = vmatpush.msra.mxu3 %v4350_v0  ;;  %616 = vmatpush.msrb.mxu0 %v4368_v6 }
  0xbe   :  { %647 = vmatpush.msrb.mxu1 %v4332_v1  ;;  %678 = vmatpush.msra.mxu2 %v4330_v49 }
  0xbf   :  { %529 = vmatmul.f32.vlgmr.msra.gmra.mxu0 %v528_v26  ;;  %727 = vmatpush.msra.mxu3 %v4365_v13 }
  0xc0   :  { %590 = vmatmul.f32.vlgmr.msra.gmra.mxu1 %v524_v60  ;;  %619 = vmatpush.msrb.mxu0 %v4388_v34 }
  0xc1   :  { %649 = vmatpush.msrb.mxu1 %v4350_v0  ;;  %682 = vmatpush.msra.mxu2 %v4348_v53 }
  0xc2   :  { %729 = vmatpush.msra.mxu3 %v4385_v62  ;;  %622 = vmatpush.msrb.mxu0 %v4410_v56 }
  0xc3   :  { %651 = vmatpush.msrb.mxu1 %v4365_v13  ;;  %686 = vmatpush.msra.mxu2 %v4372_v46 }
  0xc4   :  { %731 = vmatpush.msra.mxu3 %v4407_v30  ;;  %459 = vmatmul.f32.vlgmr.msrb.gmra.mxu2 %v191_v43  ;;  %v796_v43 = vand.u32 4294901760, %v795_v37 }
  0xc5   :  { %733 = vmatmul.f32.vlgmr.msra.gmra.mxu3 %v524_v60  ;;  %625 = vmatpush.msrb.mxu0 %v4424_v8 }
  0xc6   :  { %653 = vmatpush.msrb.mxu1 %v4385_v62  ;;  %690 = vmatpush.msra.mxu2 %v4383_v44 }
  0xc7   :  { %628 = vmatmul.f32.vlgmr.msrb.gmra.mxu0 %v525_v27  ;;  %891 = vmatpush.msrb.mxu3 %v766_v41 }
  0xc8   :  { %655 = vmatpush.msrb.mxu1 %v4407_v30  ;;  %694 = vmatpush.msra.mxu2 %v4402_v61 }
  0xc9   :  { %659 = vmatmul.f32.vlgmr.msrb.gmra.mxu1 %v526_v36  ;;  %767 = vmatpush.msra.mxu0 %v766_v41  ;;  %v749_v36 = vsel %vm746_vm3, %v741_v58, 0 }
  0xca   :  { %698 = vmatpush.msra.mxu2 %v4420_v31  ;;  %797 = vmatpush.msra.mxu1 %v796_v43  ;;  %v912_v40 = vand.u32 4294901760, %v749_v36 }
  0xcb   :  { %820 = vmatpush.msrb.mxu0 %v793_v32 }
  0xcc   :  { %702 = vmatpush.msra.mxu2 %v4433_v24  ;;  %843 = vmatpush.msrb.mxu1 %v766_v41  ;;  %v939_v26 = vsub.f32 %v749_v36, %v912_v40 }
  0xcd   :  { %704 = vmatmul.f32.vlgmr.msra.gmra.mxu2 %v524_v60  ;;  %989 = vmatpush.msra.mxu3 %v912_v40 }
  0xce   :  { %869 = vmatpush.msrb.mxu2 %v794_v52  ;;  %v940_v58 = vand.u32 4294901760, %v939_v26 }
  0xd0   :  { %966 = vmatpush.msra.mxu2 %v939_v26  ;;  %v941_v36 = vsub.f32 %v939_v26, %v940_v58  ;;  %v5102_v26 = vld [vmem:[#allocation40_spill] sm:$0xff] }
 0x131   :  { %v352_v50 = vpop.f32.mrf.mxu0 }
 0x133   :  { %v391_v60 = vpop.f32.mrf.mxu1 }
 0x135   :  { %v298_v17 = vpop.f32.mrf.mxu3 }
 0x13c   :  { %v530_v38 = vpop.f32.mrf.mxu0 }
 0x13d   :  { %v197_v47 = vpop.f32.mrf.mxu2  ;;  %v591_v32 = vpop.f32.mrf.mxu1 }
 0x13e   :  { %v299_v27 = vadd.f32 %v298_v17, %v197_v47  ;;  %v497_v24 = vpop.f32.mrf.mxu3 }
 0x140   :  { %v353_v45 = vadd.f32 %v352_v50, %v299_v27 }
 0x142   :  { %v392_v42 = vadd.f32 %v391_v60, %v353_v45  ;;  %v942_v45 = vand.u32 4294901760, %v941_v36  ;;  %v5121_v36 = vld [vmem:[#allocation49_spill] sm:$0xff] }
 0x144   :  { %v629_v17 = vpop.f32.mrf.mxu0 }
 0x146   :  { %v660_v47 = vpop.f32.mrf.mxu1 }
 0x147   :  { %v460_v52 = vpop.f32.mrf.mxu2 }
 0x148   :  { %v461_v37 = vadd.f32 %v460_v52, %v392_v42  ;;  %v734_v50 = vpop.f32.mrf.mxu3 }
 0x14a   :  { %v498_v8 = vadd.f32 %v497_v24, %v461_v37  ;;  %v5105_v37 = vld [vmem:[#allocation11_spill] sm:$0xff] }
 0x14c   :  { %v531_v31 = vadd.f32 %v530_v38, %v498_v8  ;;  %v5100_v8 = vld [vmem:[#allocation37_spill] sm:$0xff]  ;;  %v5103_v38 = vld [vmem:[#allocation10_spill] sm:$0xff] }
 0x14e   :  { %v592_v43 = vadd.f32 %v591_v32, %v531_v31  ;;  %v5099_v31 = vld [vmem:[#allocation47_spill] sm:$0xff]  ;;  %v5104_v32 = vld [vmem:[#allocation12_spill] sm:$0xff] }
 0x150   :  { %v630_v41 = vadd.f32 %v629_v17, %v592_v43  ;;  %v705_v28 = vpop.f32.mrf.mxu2  ;;  %v5106_v43 = vld [vmem:[#allocation16_spill] sm:$0xff]  ;;  %v5108_v17 = vld [vmem:[#allocation18_spill] sm:$0xff] }
 0x152   :  { %v661_v56 = vadd.f32 %v660_v47, %v630_v41  ;;  %v5110_v41 = vld [vmem:[#allocation21_spill] sm:$0xff]  ;;  %v5112_v47 = vld [vmem:[#allocation23_spill] sm:$0xff] }
 0x154   :  { %v706_v61 = vadd.f32 %v705_v28, %v661_v56  ;;  %v5116_v28 = vld [vmem:[#allocation28_spill] sm:$0xff] }
 0x156   :  { %v735_v27 = vadd.f32 %v734_v50, %v706_v61  ;;  %v5118_v50 = vld [vmem:[#allocation48_spill] sm:$0xff] }
 0x158   :  { %v737_v34 = vmul.f32 0.001953125, %v735_v27  ;;  %v5120_v27 = vld [vmem:[#allocation25_spill] sm:$0xff] }
 0x15a   :  { %v744_v60 = vsel %vm742_vm4, %v737_v34, 0  ;;  %v5087_v34 = vld [vmem:[#allocation5_spill] sm:$0xff] }
 0x15b   :  { %v768_v42 = vand.u32 4294901760, %v744_v60 }
 0x15d   :  { %v769_v52 = vsub.f32 %v744_v60, %v768_v42  ;;  %799 = vmatmul.f32.vlgmr.msra.gmra.mxu1 %v768_v42  ;;  %871 = vmatmul.f32.vlgmr.msrb.gmra.mxu2 %v768_v42  ;;  %v5123_v60 = vld [vmem:[#allocation27_spill] sm:$0xff] }
 0x15e   :  { %893 = vmatmul.f32.vlgmr.msrb.gmra.mxu3 %v768_v42  ;;  %943 = vmatpush.msra.mxu1 %v942_v45  ;;  %v5124_v45 = vld [vmem:[#allocation50_spill] sm:$0xff] }
 0x15f   :  { %v770_v24 = vand.u32 4294901760, %v769_v52  ;;  %1111 = vmatpush.msrb.mxu3 %v4055_v48  ;;  %1066 = vmatpush.msrb.mxu2 %v3968_v14  ;;  %v5088_v48 = vld [vmem:[#allocation31_spill] sm:$0xff] }
 0x161   :  { %v771_v56 = vsub.f32 %v769_v52, %v770_v24  ;;  %1117 = vmatpush.msrb.mxu3 %v4065_v51  ;;  %1068 = vmatpush.msrb.mxu2 %v3970_v15  ;;  %v5089_v51 = vld [vmem:[#allocation20_spill] sm:$0xff] }
 0x163   :  { %v772_v61 = vand.u32 4294901760, %v771_v56  ;;  %1123 = vmatpush.msrb.mxu3 %v4083_v57  ;;  %1070 = vmatpush.msrb.mxu2 %v3981_v19  ;;  %v5090_v57 = vld [vmem:[#allocation6_spill] sm:$0xff]  ;;  %v5130_v56 = vld [vmem:[#allocation55_spill] sm:$0xff] }
 0x165   :  { %773 = vmatmul.f32.vlgmr.msra.gmra.mxu0 %v772_v61  ;;  %847 = vmatmul.f32.vlgmr.msrb.gmra.mxu1 %v770_v24 }
 0x166   :  { %969 = vmatmul.f32.vlgmr.msra.gmra.mxu2 %v769_v52  ;;  %993 = vmatmul.f32.vlgmr.msra.gmra.mxu3 %v770_v24  ;;  %v5129_v24 = vld [vmem:[#allocation30_spill] sm:$0xff] }
 0x167   :  { %913 = vmatpush.msra.mxu0 %v912_v40  ;;  %1037 = vmatpush.msrb.mxu1 %v912_v40  ;;  %v5101_v40 = vld [vmem:[#allocation9_spill] sm:$0xff] }
 0x168   :  { %1129 = vmatpush.msrb.mxu3 %v4101_v63  ;;  %1072 = vmatpush.msrb.mxu2 %v3983_v20  ;;  %v5091_v63 = vld [vmem:[#allocation41_spill] sm:$0xff] }
 0x16a   :  { %1135 = vmatpush.msrb.mxu3 %v4115_v3  ;;  %1074 = vmatpush.msrb.mxu2 %v3985_v21  ;;  %v5092_v3 = vld [vmem:[#allocation24_spill] sm:$0xff] }
 0x16c   :  { %1141 = vmatpush.msrb.mxu3 %v4129_v7  ;;  %1076 = vmatpush.msrb.mxu2 %v3987_v22  ;;  %v5093_v7 = vld [vmem:[#allocation7_spill] sm:$0xff] }
 0x16d   :  { %823 = vmatmul.f32.vlgmr.msrb.gmra.mxu0 %v769_v52  ;;  %945 = vmatmul.f32.vlgmr.msra.gmra.mxu1 %v768_v42  ;;  %v5127_v52 = vld [vmem:[#allocation53_spill] sm:$0xff] }
 0x16e   :  { %1015 = vmatpush.msrb.mxu0 %v940_v58  ;;  %1147 = vmatpush.msrb.mxu3 %v4143_v11  ;;  %v5094_v11 = vld [vmem:[#allocation44_spill] sm:$0xff]  ;;  %v5114_v58 = vld [vmem:[#allocation26_spill] sm:$0xff] }
 0x16f   :  { %1078 = vmatpush.msrb.mxu2 %v4016_v33  ;;  %1262 = vmatpush.msra.mxu1 %v3968_v14 }
 0x170   :  { %1153 = vmatpush.msrb.mxu3 %v4154_v16  ;;  %v5095_v16 = vld [vmem:[#allocation32_spill] sm:$0xff] }
 0x171   :  { %1080 = vmatpush.msrb.mxu2 %v4034_v39  ;;  %1264 = vmatpush.msra.mxu1 %v3970_v15 }
 0x172   :  { %1159 = vmatpush.msrb.mxu3 %v4165_v23  ;;  %v5096_v23 = vld [vmem:[#allocation46_spill] sm:$0xff] }
 0x173   :  { %1082 = vmatpush.msrb.mxu2 %v4075_v54  ;;  %1266 = vmatpush.msra.mxu1 %v3981_v19 }
 0x174   :  { %1165 = vmatpush.msrb.mxu3 %v4173_v25  ;;  %v5097_v25 = vld [vmem:[#allocation34_spill] sm:$0xff] }
 0x175   :  { %919 = vmatmul.f32.vlgmr.msra.gmra.mxu0 %v772_v61  ;;  %1039 = vmatmul.f32.vlgmr.msrb.gmra.mxu1 %v768_v42  ;;  %v5131_v61 = vld [vmem:[#allocation35_spill] sm:$0xff] }
 0x176   :  { %1171 = vmatpush.msrb.mxu3 %v4181_v29  ;;  %1084 = vmatpush.msrb.mxu2 %v4077_v55  ;;  %v5098_v29 = vld [vmem:[#allocation8_spill] sm:$0xff] }
 0x177   :  { %1268 = vmatpush.msra.mxu1 %v3983_v20  ;;  %1209 = vmatpush.msra.mxu0 %v5087_v34  ;;  %v5132_v34 = vld [vmem:[#allocation58_spill] sm:$0xff] }
 0x178   :  { %1177 = vmatpush.msrb.mxu3 %v5088_v48  ;;  %1086 = vmatpush.msrb.mxu2 %v5089_v51  ;;  %v5133_v48 = vld [vmem:[#allocation38_spill] sm:$0xff] }
 0x179   :  { %1270 = vmatpush.msra.mxu1 %v3985_v21  ;;  %1212 = vmatpush.msra.mxu0 %v5090_v57  ;;  %v5135_v57 = vld [vmem:[#allocation42_spill] sm:$0xff] }
 0x17a   :  { %1183 = vmatpush.msrb.mxu3 %v5091_v63  ;;  %1088 = vmatpush.msrb.mxu2 %v5092_v3  ;;  %v5136_v63 = vld [vmem:[#allocation61_spill] sm:$0xff] }
 0x17b   :  { %1272 = vmatpush.msra.mxu1 %v3987_v22  ;;  %1215 = vmatpush.msra.mxu0 %v5093_v7 }
 0x17c   :  { %1189 = vmatpush.msrb.mxu3 %v5094_v11  ;;  %1090 = vmatpush.msrb.mxu2 %v5095_v16 }
 0x17d   :  { %1017 = vmatmul.f32.vlgmr.msrb.gmra.mxu0 %v768_v42  ;;  %1274 = vmatpush.msra.mxu1 %v4016_v33  ;;  %v5126_v42 = vld [vmem:[#allocation29_spill] sm:$0xff] }
 0x17e   :  { %1195 = vmatpush.msrb.mxu3 %v5096_v23  ;;  %1092 = vmatpush.msrb.mxu2 %v5097_v25 }
 0x17f   :  { %1218 = vmatpush.msra.mxu0 %v5098_v29  ;;  %1276 = vmatpush.msra.mxu1 %v4034_v39 }
 0x180   :  { %1201 = vmatpush.msrb.mxu3 %v5099_v31  ;;  %1094 = vmatpush.msrb.mxu2 %v5100_v8 }
 0x181   :  { %1221 = vmatpush.msra.mxu0 %v5101_v40  ;;  %1278 = vmatpush.msra.mxu1 %v4075_v54 }
 0x182   :  { %1370 = vmatpush.msra.mxu3 %v3968_v14  ;;  %1096 = vmatpush.msrb.mxu2 %v5102_v26  ;;  %v5107_v14 = vld [vmem:[#allocation13_spill] sm:$0xff] }
 0x183   :  { %1224 = vmatpush.msra.mxu0 %v5104_v32  ;;  %1280 = vmatpush.msra.mxu1 %v4077_v55 }
 0x184   :  { %1372 = vmatpush.msra.mxu3 %v3970_v15  ;;  %1303 = vmatpush.msra.mxu2 %v5103_v38  ;;  %v5109_v15 = vld [vmem:[#allocation14_spill] sm:$0xff] }
 0x185   :  { %1227 = vmatpush.msra.mxu0 %v5106_v43  ;;  %1282 = vmatpush.msra.mxu1 %v5089_v51 }
 0x186   :  { %1374 = vmatpush.msra.mxu3 %v3981_v19  ;;  %1307 = vmatpush.msra.mxu2 %v5105_v37  ;;  %v5111_v19 = vld [vmem:[#allocation15_spill] sm:$0xff] }
 0x187   :  { %1230 = vmatpush.msra.mxu0 %v5108_v17  ;;  %1284 = vmatpush.msra.mxu1 %v5092_v3 }
 0x188   :  { %1376 = vmatpush.msra.mxu3 %v3983_v20  ;;  %1311 = vmatpush.msra.mxu2 %v5107_v14  ;;  %v5113_v20 = vld [vmem:[#allocation17_spill] sm:$0xff] }
 0x189   :  { %1233 = vmatpush.msra.mxu0 %v5110_v41  ;;  %1286 = vmatpush.msra.mxu1 %v5095_v16 }
 0x18a   :  { %1378 = vmatpush.msra.mxu3 %v3985_v21  ;;  %1315 = vmatpush.msra.mxu2 %v5109_v15  ;;  %v5115_v21 = vld [vmem:[#allocation19_spill] sm:$0xff] }
 0x18b   :  { %1236 = vmatpush.msra.mxu0 %v5112_v47  ;;  %1288 = vmatpush.msra.mxu1 %v5097_v25 }
 0x18c   :  { %1380 = vmatpush.msra.mxu3 %v3987_v22  ;;  %1319 = vmatpush.msra.mxu2 %v5111_v19  ;;  %v5117_v22 = vld [vmem:[#allocation22_spill] sm:$0xff] }
 0x18d   :  { %1239 = vmatpush.msra.mxu0 %v5114_v58  ;;  %1290 = vmatpush.msra.mxu1 %v5100_v8 }
 0x18e   :  { %1382 = vmatpush.msra.mxu3 %v4016_v33  ;;  %1323 = vmatpush.msra.mxu2 %v5113_v20  ;;  %v5119_v33 = vld [vmem:[#allocation33_spill] sm:$0xff] }
 0x18f   :  { %1242 = vmatpush.msra.mxu0 %v5116_v28  ;;  %1292 = vmatpush.msra.mxu1 %v5102_v26 }
 0x190   :  { %1384 = vmatpush.msra.mxu3 %v4034_v39  ;;  %1327 = vmatpush.msra.mxu2 %v5115_v21  ;;  %v5122_v39 = vld [vmem:[#allocation36_spill] sm:$0xff] }
 0x191   :  { %1452 = vmatpush.msrb.mxu1 %v5118_v50  ;;  %1245 = vmatpush.msra.mxu0 %v5119_v33 }
 0x192   :  { %1386 = vmatpush.msra.mxu3 %v4075_v54  ;;  %1331 = vmatpush.msra.mxu2 %v5117_v22  ;;  %v5125_v54 = vld [vmem:[#allocation39_spill] sm:$0xff] }
 0x193   :  { %1458 = vmatpush.msrb.mxu1 %v5121_v36  ;;  %1248 = vmatpush.msra.mxu0 %v5122_v39 }
 0x194   :  { %1388 = vmatpush.msra.mxu3 %v4077_v55  ;;  %1335 = vmatpush.msra.mxu2 %v5120_v27  ;;  %v5128_v55 = vld [vmem:[#allocation43_spill] sm:$0xff] }
 0x195   :  { %1464 = vmatpush.msrb.mxu1 %v5124_v45  ;;  %1251 = vmatpush.msra.mxu0 %v5125_v54 }
 0x196   :  { %1390 = vmatpush.msra.mxu3 %v5089_v51  ;;  %1339 = vmatpush.msra.mxu2 %v5123_v60  ;;  %v5134_v51 = vld [vmem:[#allocation60_spill] sm:$0xff]  ;;  %v5138_v60 = vld [vmem:[#allocation62_spill] sm:$0xff] }
 0x197   :  { %1470 = vmatpush.msrb.mxu1 %v5127_v52  ;;  %1254 = vmatpush.msra.mxu0 %v5128_v55 }
 0x198   :  { %1392 = vmatpush.msra.mxu3 %v5092_v3  ;;  %1343 = vmatpush.msra.mxu2 %v5126_v42  ;;  %v5137_v3 = vld [vmem:[#allocation45_spill] sm:$0xff] }
 0x199   :  { %1415 = vmatpush.msrb.mxu0 %v4288_v4  ;;  %1476 = vmatpush.msrb.mxu1 %v5130_v56 }
 0x19a   :  { %1394 = vmatpush.msra.mxu3 %v5095_v16  ;;  %1347 = vmatpush.msra.mxu2 %v5129_v24 }
 0x19b   :  { %1417 = vmatpush.msrb.mxu0 %v4296_v12  ;;  %1482 = vmatpush.msrb.mxu1 %v5132_v34 }
 0x19c   :  { %1396 = vmatpush.msra.mxu3 %v5097_v25  ;;  %1351 = vmatpush.msra.mxu2 %v5131_v61 }
 0x19d   :  { %1419 = vmatpush.msrb.mxu0 %v4310_v10  ;;  %1488 = vmatpush.msrb.mxu1 %v5134_v51 }
 0x19e   :  { %1398 = vmatpush.msra.mxu3 %v5100_v8  ;;  %1355 = vmatpush.msra.mxu2 %v5133_v48 }
 0x19f   :  { %1421 = vmatpush.msrb.mxu0 %v4332_v1  ;;  %1494 = vmatpush.msrb.mxu1 %v5136_v63 }
 0x1a0   :  { %1400 = vmatpush.msra.mxu3 %v5102_v26  ;;  %1359 = vmatpush.msra.mxu2 %v5135_v57 }
 0x1a1   :  { %1423 = vmatpush.msrb.mxu0 %v4350_v0 }
 0x1a2   :  { %1363 = vmatpush.msra.mxu2 %v5137_v3 }
 0x1a3   :  { %1425 = vmatpush.msrb.mxu0 %v4365_v13 }
 0x1a5   :  { %1427 = vmatpush.msrb.mxu0 %v4385_v62 }
 0x1a7   :  { %1429 = vmatpush.msrb.mxu0 %v4407_v30 }
 0x1da   :  { %v800_v7 = vpop.f32.mrf.mxu1 }
 0x1e0   :  { %v872_v25 = vpop.f32.mrf.mxu2 }
 0x1e1   :  { %v894_v40 = vpop.f32.mrf.mxu3 }
 0x1e2   :  { %v774_v11 = vpop.f32.mrf.mxu0  ;;  %v848_v16 = vpop.f32.mrf.mxu1 }
 0x1e3   :  { %v801_v23 = vadd.f32 %v800_v7, %v774_v11 }
 0x1e9   :  { %v970_v17 = vpop.f32.mrf.mxu2  ;;  %v994_v47 = vpop.f32.mrf.mxu3 }
 0x1ea   :  { %v824_v29 = vpop.f32.mrf.mxu0  ;;  %v946_v32 = vpop.f32.mrf.mxu1 }
 0x1eb   :  { %v825_v31 = vadd.f32 %v824_v29, %v801_v23 }
 0x1ed   :  { %v849_v8 = vadd.f32 %v848_v16, %v825_v31  ;;  %v1656_v16 = vld.sshfl [vmem:[#allocation1] sm:$0xff pattern:$0x75316420] }
 0x1ef   :  { %v873_v26 = vadd.f32 %v872_v25, %v849_v8 }
 0x1f1   :  { %v895_v38 = vadd.f32 %v894_v40, %v873_v26 }
 0x1f2   :  { %v920_v37 = vpop.f32.mrf.mxu0  ;;  %v1040_v50 = vpop.f32.mrf.mxu1 }
 0x1f3   :  { %v1043_v43 = vperm.slane %v895_v38, 0  ;;  %v947_v14 = vadd.f32 %v946_v32, %v920_v37 }
 0x1f5   :  { %v4604_v15 = vsub.f32 %v4444_v2, %v1043_v43  ;;  %v971_v41 = vadd.f32 %v970_v17, %v947_v14 }
 0x1f7   :  { %v1047_v19 = vmul.f32 %v4604_v15, %v4604_v15  ;;  %v995_v58 = vadd.f32 %v994_v47, %v971_v41 }
 0x1f9   :  { %v1049_v20 = vrot.slane %v1047_v19, 4 }
 0x1fa   :  { %v1018_v21 = vpop.f32.mrf.mxu0 }
 0x1fb   :  { %v1050_v28 = vadd.f32 %v1049_v20, %v1047_v19  ;;  %v1019_v22 = vadd.f32 %v1018_v21, %v995_v58  ;;  %v1657_v21 = vld.sshfl [vmem:[#allocation1 + $0x8] sm:$0xff pattern:$0x75316420] }
 0x1fd   :  { %v1041_v33 = vadd.f32 %v1040_v50, %v1019_v22  ;;  %v1051_v27 = vrot.slane %v1050_v28, 2  ;;  %v1663_v22 = vsel %vm746_vm3, %v1657_v21, 0  ;;  %v4735_v21 = vld [vmem:[%s4963_s9] sm:$0xff] }
 0x1ff   :  { %v1044_v36 = vperm.slane %v1041_v33, 0  ;;  %v1052_v39 = vadd.f32 %v1051_v27, %v1050_v28  ;;  %v1826_v33 = vand.u32 4294901760, %v1663_v22 }
 0x201   :  { %v4609_v45 = vsub.f32 %v5138_v60, %v1044_v36  ;;  %v1053_v2 = vrot.slane %v1052_v39, 1 }
 0x203   :  { %v1048_v54 = vmul.f32 %v4609_v45, %v4609_v45  ;;  %v1054_v42 = vadd.f32 %v1053_v2, %v1052_v39  ;;  %v1853_v39 = vsub.f32 %v1663_v22, %v1826_v33 }
 0x205   :  { %v1055_v52 = vsel %vm148_vm2, %v1048_v54, 0.0  ;;  %v1097_v55 = vand.u32 4294901760, %v1054_v42 }
 0x206   :  { %v1056_v24 = vrot.slane %v1055_v52, 4 }
 0x207   :  { %1203 = vmatmul.f32.vlgmr.msrb.gmra.mxu3 %v1097_v55  ;;  %v1098_v56 = vsub.f32 %v1054_v42, %v1097_v55 }
 0x208   :  { %v1057_v61 = vadd.f32 %v1056_v24, %v1055_v52  ;;  %1623 = vmatpush.msrb.mxu3 %v4288_v4 }
 0x209   :  { %1257 = vmatmul.f32.vlgmr.msra.gmra.mxu0 %v1098_v56  ;;  %v1099_v34 = vand.u32 4294901760, %v1098_v56 }
 0x20a   :  { %v1058_v48 = vrot.slane %v1057_v61, 2  ;;  %1625 = vmatpush.msrb.mxu3 %v4296_v12  ;;  %1510 = vmatpush.msra.mxu0 %v4299_v5 }
 0x20b   :  { %1296 = vmatmul.f32.vlgmr.msra.gmra.mxu1 %v1099_v34  ;;  %v1100_v51 = vsub.f32 %v1098_v56, %v1099_v34 }
 0x20c   :  { %v1059_v57 = vadd.f32 %v1058_v48, %v1057_v61  ;;  %1627 = vmatpush.msrb.mxu3 %v4310_v10  ;;  %1547 = vmatpush.msra.mxu1 %v4288_v4  ;;  %v5142_v4 = vld [vmem:[#allocation56_spill] sm:$0xff] }
 0x20d   :  { %v1101_v63 = vand.u32 4294901760, %v1100_v51  ;;  %1513 = vmatpush.msra.mxu0 %v4313_v59 }
 0x20e   :  { %1629 = vmatpush.msrb.mxu3 %v4332_v1  ;;  %1549 = vmatpush.msra.mxu1 %v4296_v12  ;;  %v1060_v3 = vrot.slane %v1059_v57, 1 }
 0x20f   :  { %1102 = vmatmul.f32.vlgmr.msrb.gmra.mxu2 %v1101_v63  ;;  %1402 = vmatmul.f32.vlgmr.msra.gmra.mxu3 %v1097_v55 }
 0x210   :  { %1580 = vmatpush.msrb.mxu2 %v4308_v9  ;;  %1631 = vmatpush.msrb.mxu3 %v4350_v0  ;;  %v1061_v5 = vadd.f32 %v1060_v3, %v1059_v57 }
 0x211   :  { %1551 = vmatpush.msra.mxu1 %v4310_v10  ;;  %1516 = vmatpush.msra.mxu0 %v4335_v18  ;;  %v5141_v18 = vld [vmem:[#allocation54_spill] sm:$0xff] }
 0x212   :  { %1584 = vmatpush.msrb.mxu2 %v4330_v49  ;;  %1633 = vmatpush.msrb.mxu3 %v4365_v13  ;;  %v1063_v59 = vsel %vm148_vm2, %v1061_v5, 0 }
 0x213   :  { %1553 = vmatpush.msra.mxu1 %v4332_v1  ;;  %v1430_v12 = vand.u32 4294901760, %v1063_v59  ;;  %1519 = vmatpush.msra.mxu0 %v4353_v35  ;;  %v5140_v1 = vld [vmem:[#allocation52_spill] sm:$0xff] }
 0x214   :  { %1588 = vmatpush.msrb.mxu2 %v4348_v53  ;;  %1635 = vmatpush.msrb.mxu3 %v4385_v62  ;;  %v5139_v53 = vld [vmem:[#allocation51_spill] sm:$0xff] }
 0x215   :  { %v1431_v9 = vsub.f32 %v1063_v59, %v1430_v12  ;;  %1496 = vmatmul.f32.vlgmr.msrb.gmra.mxu1 %v1430_v12  ;;  %1522 = vmatpush.msra.mxu0 %v4368_v6 }
 0x216   :  { %1555 = vmatpush.msra.mxu1 %v4350_v0  ;;  %1592 = vmatpush.msrb.mxu2 %v4372_v46  ;;  %v5143_v0 = vld [vmem:[#allocation57_spill] sm:$0xff] }
 0x217   :  { %1637 = vmatpush.msrb.mxu3 %v4407_v30  ;;  %1365 = vmatmul.f32.vlgmr.msra.gmra.mxu2 %v1097_v55  ;;  %v1432_v49 = vand.u32 4294901760, %v1431_v9  ;;  %v1854_v55 = vand.u32 4294901760, %v1853_v39 }
 0x218   :  { %1639 = vmatmul.f32.vlgmr.msrb.gmra.mxu3 %v1430_v12  ;;  %1557 = vmatpush.msra.mxu1 %v4365_v13  ;;  %v5144_v13 = vld [vmem:[#allocation59_spill] sm:$0xff] }
 0x219   :  { %1596 = vmatpush.msrb.mxu2 %v4383_v44  ;;  %v1433_v35 = vsub.f32 %v1431_v9, %v1432_v49  ;;  %1525 = vmatpush.msra.mxu0 %v5139_v53  ;;  %v1855_v61 = vsub.f32 %v1853_v39, %v1854_v55  ;;  %v3838_v53 = vld [vmem:[%s4957_s3 + $0x30] sm:$0xff] }
 0x21a   :  { %1559 = vmatpush.msra.mxu1 %v4385_v62 }
 0x21b   :  { %1600 = vmatpush.msrb.mxu2 %v5140_v1  ;;  %v1434_v10 = vand.u32 4294901760, %v1433_v35  ;;  %1528 = vmatpush.msra.mxu0 %v5141_v18  ;;  %v1856_v57 = vand.u32 4294901760, %v1855_v61  ;;  %v3826_v35 = vld [vmem:[%s4956_s2 + $0x30] sm:$0xff]  ;;  %v3825_v1 = vld [vmem:[%s4956_s2 + $0x28] sm:$0xff]  ;;  %v3824_v18 = vld [vmem:[%s4956_s2 + $0x20] sm:$0xff] }
 0x21c   :  { %1561 = vmatpush.msra.mxu1 %v4407_v30  ;;  %v1661_v30 = vsel %vm746_vm3, %v1656_v16, 0  ;;  %v3834_v16 = vld [vmem:[%s4957_s3 + $0x10] sm:$0xff] }
 0x21d   :  { %1604 = vmatpush.msrb.mxu2 %v5142_v4  ;;  %1435 = vmatmul.f32.vlgmr.msrb.gmra.mxu0 %v1434_v10  ;;  %v1680_v8 = vand.u32 4294901760, %v1661_v30  ;;  %v3837_v10 = vld [vmem:[%s4957_s3 + $0x28] sm:$0xff]  ;;  %v3836_v4 = vld [vmem:[%s4957_s3 + $0x20] sm:$0xff] }
 0x21e   :  { %1565 = vmatmul.f32.vlgmr.msra.gmra.mxu1 %v1432_v49  ;;  %1531 = vmatpush.msra.mxu0 %v5143_v0  ;;  %v3839_v49 = vld [vmem:[%s4957_s3 + $0x38] sm:$0xff] }
 0x21f   :  { %1608 = vmatpush.msrb.mxu2 %v5144_v13  ;;  %v1707_v38 = vsub.f32 %v1661_v30, %v1680_v8  ;;  %1805 = vmatpush.msra.mxu3 %v1680_v8  ;;  %v3823_v0 = vld [vmem:[%s4956_s2 + $0x18] sm:$0xff]  ;;  %v3829_v30 = vld [vmem:[%s4956_s2 + $0x48] sm:$0xff] }
 0x220   :  { %1610 = vmatmul.f32.vlgmr.msrb.gmra.mxu2 %v1430_v12  ;;  %1681 = vmatpush.msrb.mxu0 %v1680_v8  ;;  %v3831_v13 = vld [vmem:[%s4956_s2 + $0x58] sm:$0xff] }
 0x221   :  { %v1708_v37 = vand.u32 4294901760, %v1707_v38  ;;  %1903 = vmatpush.msrb.mxu3 %v1826_v33 }
 0x223   :  { %v1709_v14 = vsub.f32 %v1707_v38, %v1708_v37  ;;  %1783 = vmatpush.msra.mxu2 %v1708_v37 }
 0x225   :  { %1534 = vmatmul.f32.vlgmr.msra.gmra.mxu0 %v1431_v9  ;;  %v1710_v19 = vand.u32 4294901760, %v1709_v14  ;;  %1880 = vmatpush.msrb.mxu2 %v1853_v39  ;;  %v3827_v9 = vld [vmem:[%s4956_s2 + $0x38] sm:$0xff]  ;;  %v3840_v14 = vld [vmem:[%s4957_s3 + $0x40] sm:$0xff] }
 0x226   :  { %1734 = vmatpush.msra.mxu0 %v1707_v38  ;;  %v3828_v38 = vld [vmem:[%s4956_s2 + $0x40] sm:$0xff] }
 0x227   :  { %1711 = vmatpush.msrb.mxu1 %v1710_v19 }
 0x229   :  { %1757 = vmatpush.msra.mxu1 %v1680_v8  ;;  %v3841_v8 = vld [vmem:[%s4957_s3 + $0x48] sm:$0xff] }
 0x286   :  { %v1258_v6 = vpop.f32.mrf.mxu0 }
 0x288   :  { %v1297_v46 = vpop.f32.mrf.mxu1 }
 0x28a   :  { %v1204_v62 = vpop.f32.mrf.mxu3 }
 0x292   :  { %v1103_v44 = vpop.f32.mrf.mxu2  ;;  %v1497_v23 = vpop.f32.mrf.mxu1 }
 0x293   :  { %v1205_v7 = vadd.f32 %v1204_v62, %v1103_v44  ;;  %v1403_v26 = vpop.f32.mrf.mxu3  ;;  %v3843_v62 = vld [vmem:[%s4957_s3 + $0x58] sm:$0xff]  ;;  %v3822_v44 = vld [vmem:[%s4956_s2 + $0x10] sm:$0xff] }
 0x295   :  { %v1259_v11 = vadd.f32 %v1258_v6, %v1205_v7  ;;  %v3830_v7 = vld [vmem:[%s4956_s2 + $0x50] sm:$0xff] }
 0x297   :  { %v1298_v25 = vadd.f32 %v1297_v46, %v1259_v11  ;;  %v3835_v46 = vld [vmem:[%s4957_s3 + $0x18] sm:$0xff] }
 0x29a   :  { %v1366_v29 = vpop.f32.mrf.mxu2  ;;  %v1436_v31 = vpop.f32.mrf.mxu0 }
 0x29b   :  { %v1367_v40 = vadd.f32 %v1366_v29, %v1298_v25  ;;  %v1566_v20 = vpop.f32.mrf.mxu1  ;;  %v1640_v27 = vpop.f32.mrf.mxu3  ;;  %v3821_v25 = vld [vmem:[%s4956_s2 + $0x8] sm:$0xff]  ;;  %v2268_v29 = vld [vmem:[%s4962_s8] sm:$0x7] }
 0x29d   :  { %v1404_v32 = vadd.f32 %v1403_v26, %v1367_v40  ;;  %v3820_v40 = vld [vmem:[%s4956_s2] sm:$0xff] }
 0x29f   :  { %v1437_v43 = vadd.f32 %v1436_v31, %v1404_v32  ;;  %v3833_v31 = vld [vmem:[%s4957_s3 + $0x8] sm:$0xff]  ;;  %v4720_v32 = vsel %vm746_vm3, %v2268_v29, 0 }
 0x2a1   :  { %v1498_v17 = vadd.f32 %v1497_v23, %v1437_v43  ;;  %v3842_v23 = vld [vmem:[%s4957_s3 + $0x50] sm:$0xff]  ;;  %v3832_v43 = vld [vmem:[%s4957_s3] sm:$0xff] }
 0x2a2   :  { %v1535_v41 = vpop.f32.mrf.mxu0 }
 0x2a3   :  { %v1536_v47 = vadd.f32 %v1535_v41, %v1498_v17  ;;  %v1611_v28 = vpop.f32.mrf.mxu2 }
 0x2a5   :  { %v1567_v58 = vadd.f32 %v1566_v20, %v1536_v47  ;;  %v4729_v47 = vand.u32 4294901760, %v4720_v32 }
 0x2a7   :  { %v1612_v50 = vadd.f32 %v1611_v28, %v1567_v58  ;;  %v3861_v28 = vld [vmem:[%s4963_s9 + $0x8] sm:$0xff] }
 0x2a8   :  { %v2106_v22 = vpack.c.bf16 %v3861_v28, %v4735_v21 }
 0x2a9   :  { %v1641_v36 = vadd.f32 %v1640_v27, %v1612_v50 }
 0x2ab   :  { %v1643_v60 = vmul.f32 0.001953125, %v1641_v36  ;;  %v2109_v36 = vunpack.c.h.b16 %v2106_v22 }
 0x2ad   :  { %v1644_v2 = vadd.f32 1e-05, %v1643_v60  ;;  %v2108_v60 = vunpack.c.l.b16 %v2106_v22 }
 0x2af   :  { %3850 = vrsqrt.f32 %v1644_v2  ;;  %vm1651_vm6 = vweird.f32 %v1644_v2 }
 0x2b5   :  { %v3851_v54 = vpop.eup %3850 }
 0x2b6   :  { %v1646_v42 = vmul.f32 %v3851_v54, %v1644_v2  ;;  %vm1652_vm5 = vweird.f32 %v3851_v54 }
 0x2b7   :  { %vm1653_vm7 = vmor %vm1651_vm6, %vm1652_vm5 }
 0x2b8   :  { %v1647_v52 = vmul.f32 %v3851_v54, %v1646_v42  ;;  %v1959_v42 = vrot.slane %v4735_v21, 1 }
 0x2ba   :  { %v1648_v24 = vmul.f32 0.5, %v1647_v52 }
 0x2bc   :  { %v1649_v56 = vsub.f32 1.5, %v1648_v24  ;;  %v2110_v24 = vpack.c.b16 %v2108_v60, %v2108_v60 }
 0x2be   :  { %v1650_v34 = vmul.f32 %v3851_v54, %v1649_v56 }
 0x2c0   :  { %v1654_v48 = vsel %vm1653_vm7, %v3851_v54, %v1650_v34 }
 0x2c1   :  { %v1659_v51 = vsel %vm742_vm4, %v1654_v48, 0 }
 0x2c2   :  { %v1682_v63 = vand.u32 4294901760, %v1659_v51 }
 0x2c4   :  { %v1683_v3 = vsub.f32 %v1659_v51, %v1682_v63  ;;  %1713 = vmatmul.f32.vlgmr.msrb.gmra.mxu1 %v1682_v63  ;;  %1785 = vmatmul.f32.vlgmr.msra.gmra.mxu2 %v1682_v63 }
 0x2c5   :  { %1807 = vmatmul.f32.vlgmr.msra.gmra.mxu3 %v1682_v63  ;;  %1857 = vmatpush.msrb.mxu1 %v1856_v57 }
 0x2c6   :  { %v1684_v5 = vand.u32 4294901760, %v1683_v3  ;;  %2080 = vmatpush.bf16.msra.mxu2 %v3827_v9  ;;  %2097 = vmatpush.bf16.msra.mxu3 %v3831_v13 }
 0x2c8   :  { %v1685_v59 = vsub.f32 %v1683_v3, %v1684_v5 }
 0x2ca   :  { %v1686_v12 = vand.u32 4294901760, %v1685_v59  ;;  %2081 = vmatpush.bf16.msra.mxu2 %v3826_v35  ;;  %2098 = vmatpush.bf16.msra.mxu3 %v3830_v7 }
 0x2cc   :  { %1687 = vmatmul.f32.vlgmr.msrb.gmra.mxu0 %v1686_v12  ;;  %1761 = vmatmul.f32.vlgmr.msra.gmra.mxu1 %v1684_v5 }
 0x2cd   :  { %1883 = vmatmul.f32.vlgmr.msrb.gmra.mxu2 %v1683_v3  ;;  %1907 = vmatmul.f32.vlgmr.msrb.gmra.mxu3 %v1684_v5 }
 0x2ce   :  { %1827 = vmatpush.msrb.mxu0 %v1826_v33  ;;  %1951 = vmatpush.msra.mxu1 %v1826_v33 }
 0x2cf   :  { %2082 = vmatpush.bf16.msra.mxu2 %v3825_v1  ;;  %2099 = vmatpush.bf16.msra.mxu3 %v3829_v30 }
 0x2d3   :  { %2083 = vmatpush.bf16.msra.mxu2 %v3824_v18  ;;  %2100 = vmatpush.bf16.msra.mxu3 %v3828_v38  ;;  %v1970_v18 = vperm.slane %v3861_v28, 2  ;;  %v2265_v38 = vld [vmem:[%s4961_s7] sm:$0xff] }
 0x2d4   :  { %1737 = vmatmul.f32.vlgmr.msra.gmra.mxu0 %v1683_v3  ;;  %1859 = vmatmul.f32.vlgmr.msrb.gmra.mxu1 %v1682_v63  ;;  %v2113_v3 = vshrl.u32 %v2110_v24, 16 }
 0x2d5   :  { %1929 = vmatpush.msra.mxu0 %v1854_v55  ;;  %2247 = vmatpush.bf16.msrb.mxu1 %v3843_v62  ;;  %v2111_v55 = vpack.c.b16 %v2109_v36, %v2109_v36 }
 0x2d6   :  { %v2114_v35 = vpack.i.b16 %v2113_v3, %v2113_v3 }
 0x2d7   :  { %2084 = vmatpush.bf16.msra.mxu2 %v3823_v0  ;;  %v2118_v51 = vshrl.u32 %v2111_v55, 16 }
 0x2d8   :  { %v2116_v0 = vperm.slane %v2114_v35, 1 }
 0x2d9   :  { %2248 = vmatpush.bf16.msrb.mxu1 %v3842_v23  ;;  %v2119_v9 = vpack.i.b16 %v2118_v51, %v2118_v51 }
 0x2db   :  { %2085 = vmatpush.bf16.msra.mxu2 %v3822_v44  ;;  %v2121_v13 = vperm.slane %v2119_v9, 1  ;;  %v2124_v44 = vunpack.c.l.bf16 %v2116_v0 }
 0x2dc   :  { %1833 = vmatmul.f32.vlgmr.msrb.gmra.mxu0 %v1686_v12  ;;  %1953 = vmatmul.f32.vlgmr.msra.gmra.mxu1 %v1682_v63 }
 0x2dd   :  { %2230 = vmatpush.bf16.msrb.mxu0 %v3839_v49  ;;  %2249 = vmatpush.bf16.msrb.mxu1 %v3841_v8  ;;  %v2125_v7 = vunpack.c.l.bf16 %v2121_v13 }
 0x2df   :  { %2086 = vmatpush.bf16.msra.mxu2 %v3821_v25 }
 0x2e1   :  { %2231 = vmatpush.bf16.msrb.mxu0 %v3838_v53  ;;  %2250 = vmatpush.bf16.msrb.mxu1 %v3840_v14  ;;  %v4760_v14 = vand.u32 4294901760, %v2265_v38 }
 0x2e3   :  { %2087 = vmatpush.bf16.msra.mxu2 %v3820_v40  ;;  %v2267_v40 = vld [vmem:[%s4961_s7 + $0x10] sm:$0xff] }
 0x2e4   :  { %1931 = vmatmul.f32.vlgmr.msra.gmra.mxu0 %v1682_v63  ;;  %v1960_v63 = vrot.slane %v3861_v28, 1 }
 0x2e5   :  { %2232 = vmatpush.bf16.msrb.mxu0 %v3837_v10  ;;  %v1969_v10 = vperm.slane %v4735_v21, 2 }
 0x2e9   :  { %2233 = vmatpush.bf16.msrb.mxu0 %v3836_v4 }
 0x2ed   :  { %2234 = vmatpush.bf16.msrb.mxu0 %v3835_v46 }
 0x2f1   :  { %2235 = vmatpush.bf16.msrb.mxu0 %v3834_v16 }
 0x2f5   :  { %2236 = vmatpush.bf16.msrb.mxu0 %v3833_v31 }
 0x2f9   :  { %2237 = vmatpush.bf16.msrb.mxu0 %v3832_v43 }
 0x2fd   :  { %2474 = vmatpush.msra.mxu0 %v4729_v47 }
 0x341   :  { %v1714_v6 = vpop.f32.mrf.mxu1 }
 0x347   :  { %v1786_v17 = vpop.f32.mrf.mxu2 }
 0x348   :  { %v1808_v58 = vpop.f32.mrf.mxu3 }
 0x349   :  { %v1688_v11 = vpop.f32.mrf.mxu0  ;;  %v1762_v26 = vpop.f32.mrf.mxu1 }
 0x34a   :  { %v1715_v37 = vadd.f32 %v1714_v6, %v1688_v11 }
 0x350   :  { %v1884_v2 = vpop.f32.mrf.mxu2  ;;  %v1908_v56 = vpop.f32.mrf.mxu3 }
 0x351   :  { %v1738_v41 = vpop.f32.mrf.mxu0  ;;  %v1860_v33 = vpop.f32.mrf.mxu1 }
 0x352   :  { %v1739_v19 = vadd.f32 %v1738_v41, %v1715_v37  ;;  %v4756_v37 = vand.u32 4294901760, %v2267_v40 }
 0x354   :  { %v1763_v20 = vadd.f32 %v1762_v26, %v1739_v19  ;;  %v2266_v26 = vld [vmem:[%s4961_s7 + $0x8] sm:$0xff]  ;;  %2293 = vmatpush.msrb.mxu3 %v4756_v37  ;;  %v4770_v19 = vsub.f32 %v2265_v38, %v4760_v14 }
 0x355   :  { %v4758_v43 = vand.u32 4294901760, %v2266_v26 }
 0x356   :  { %v1787_v50 = vadd.f32 %v1786_v17, %v1763_v20  ;;  %v4764_v17 = vsub.f32 %v2267_v40, %v4756_v37  ;;  %v2154_v20 = vperm.slane %v4735_v21, 5  ;;  %v4781_v22 = vand.u32 4294901760, %v4770_v19 }
 0x357   :  { %v4767_v41 = vsub.f32 %v2266_v26, %v4758_v43  ;;  %2295 = vmatpush.msrb.mxu3 %v4758_v43 }
 0x358   :  { %v1809_v54 = vadd.f32 %v1808_v58, %v1787_v50  ;;  %v4774_v58 = vand.u32 4294901760, %v4764_v17 }
 0x359   :  { %v1834_v27 = vpop.f32.mrf.mxu0  ;;  %v1954_v5 = vpop.f32.mrf.mxu1  ;;  %v4777_v28 = vand.u32 4294901760, %v4767_v41  ;;  %2297 = vmatpush.msrb.mxu3 %v4760_v14 }
 0x35a   :  { %v1861_v39 = vadd.f32 %v1860_v33, %v1834_v27  ;;  %v1963_v61 = vmul.f32 %v1959_v42, %v1809_v54  ;;  %v2323_v50 = vsub.f32 %v4764_v17, %v4774_v58  ;;  %2413 = vmatpush.msrb.mxu2 %v4774_v58  ;;  %v2335_v27 = vsub.f32 %v4770_v19, %v4781_v22 }
 0x35b   :  { %v2329_v33 = vsub.f32 %v4767_v41, %v4777_v28 }
 0x35c   :  { %v1885_v52 = vadd.f32 %v1884_v2, %v1861_v39  ;;  %v1965_v59 = vperm.slane %v1963_v61, 0  ;;  %v1998_v2 = vperm.slane %v4735_v21, 4  ;;  %v4793_v54 = vand.u32 4294901760, %v2323_v50  ;;  %2417 = vmatpush.msrb.mxu2 %v4777_v28 }
 0x35d   :  { %v4795_v42 = vand.u32 4294901760, %v2329_v33  ;;  %v4800_v55 = vand.u32 4294901760, %v2335_v27 }
 0x35e   :  { %v1909_v34 = vadd.f32 %v1908_v56, %v1885_v52  ;;  %v1967_v53 = vmul.f32 %v1965_v59, %v4604_v15  ;;  %2325 = vmatpush.msra.mxu1 %v4793_v54  ;;  %2421 = vmatpush.msrb.mxu2 %v4781_v22 }
 0x360   :  { %v1971_v6 = vadd.f32 %v1969_v10, %v1967_v53  ;;  %2331 = vmatpush.msra.mxu1 %v4795_v42 }
 0x361   :  { %v1932_v48 = vpop.f32.mrf.mxu0 }
 0x362   :  { %v1933_v57 = vadd.f32 %v1932_v48, %v1909_v34  ;;  %2337 = vmatpush.msra.mxu1 %v4800_v55 }
 0x364   :  { %v1955_v12 = vadd.f32 %v1954_v5, %v1933_v57 }
 0x366   :  { %v1964_v49 = vmul.f32 %v1960_v63, %v1955_v12 }
 0x368   :  { %v1966_v1 = vperm.slane %v1964_v49, 0 }
 0x36a   :  { %v1968_v4 = vmul.f32 %v1966_v1, %v4609_v45 }
 0x36c   :  { %v1972_v46 = vadd.f32 %v1970_v18, %v1968_v4 }
 0x36e   :  { %v1973_v62 = vpack.c.bf16 %v1972_v46, %v1971_v6 }
 0x370   :  { %v2000_v11 = vunpack.c.l.b16 %v1973_v62  ;;  %v2001_v16 = vunpack.c.h.b16 %v1973_v62  ;;  %v2122_v23 = vunpack.c.l.bf16 %v1973_v62  ;;  %v2123_v25 = vunpack.c.h.bf16 %v1973_v62 }
 0x372   :  { %v2002_v30 = vpack.c.b16 %v2000_v11, %v2000_v11  ;;  %v2003_v29 = vpack.c.b16 %v2001_v16, %v2001_v16  ;;  %v2126_v15 = vmul.f32 %v2124_v44, %v2122_v23  ;;  %v2127_v31 = vmul.f32 %v2125_v7, %v2123_v25 }
 0x373   :  { %v4825_v25 = vsub.f32 %v4720_v32, %v4729_v47 }
 0x374   :  { %2088 = vmatmul.bf16.vlgmr.msra.gmra.mxu2 %v2002_v30  ;;  %3763 = vmatmul.msk.bf16.vlgmr.msra.gmra.mxu3 %vm148_vm2, %v2003_v29  ;;  %v2128_v8 = vpack.c.bf16 %v2126_v15, %v2126_v15  ;;  %v2129_v45 = vpack.c.bf16 %v2127_v31, %v2127_v31 }
 0x375   :  { %2358 = vmatpush.msra.mxu3 %v4764_v17  ;;  %2527 = vmatpush.msra.mxu2 %v4825_v25  ;;  %v4829_v30 = vand.u32 4294901760, %v4825_v25 }
 0x376   :  { %2238 = vmatmul.bf16.vlgmr.msrb.gmra.mxu0 %v2128_v8  ;;  %3812 = vmatmul.msk.bf16.vlgmr.msrb.gmra.mxu1 %vm148_vm2, %v2129_v45 }
 0x377   :  { %2361 = vmatpush.msra.mxu3 %v4767_v41  ;;  %2385 = vmatpush.msrb.mxu1 %v4756_v37  ;;  %v2502_v29 = vsub.f32 %v4825_v25, %v4829_v30 }
 0x378   :  { %2576 = vmatpush.msrb.mxu0 %v4829_v30 }
 0x379   :  { %2364 = vmatpush.msra.mxu3 %v4770_v19  ;;  %2387 = vmatpush.msrb.mxu1 %v4758_v43  ;;  %v4836_v15 = vand.u32 4294901760, %v2502_v29 }
 0x37b   :  { %2389 = vmatpush.msrb.mxu1 %v4760_v14 }
 0x3f3   :  { %v2239_v36 = vpop.f32.mrf.mxu0  ;;  %v2252_v39 = vpop.f32.mrf.mxu1 }
 0x3f4   :  { %v2240_v60 = vadd.f32 %v2239_v36, %v2154_v20 }
 0x3f6   :  { %v2253_v52 = vadd.f32 %v2252_v39, %v2240_v60 }
 0x3f7   :  { %v2089_v24 = vpop.f32.mrf.mxu2  ;;  %v2102_v56 = vpop.f32.mrf.mxu3 }
 0x3f8   :  { %v2257_v61 = vmul.f32 0.044715, %v2253_v52  ;;  %v2090_v34 = vadd.f32 %v2089_v24, %v1998_v2  ;;  %v2256_v35 = vmul.f32 0.5, %v2253_v52 }
 0x3fa   :  { %v2258_v48 = vmul.f32 %v2257_v61, %v2253_v52  ;;  %v4805_v51 = vadd.f32 %v2102_v56, %v2090_v34 }
 0x3fb   :  { %v2241_v57 = vpop.f32.mrf.mxu0  ;;  %v2254_v63 = vpop.f32.mrf.mxu1 }
 0x3fc   :  { %v2259_v3 = vmul.f32 %v2258_v48, %v2253_v52 }
 0x3fe   :  { %v2260_v5 = vadd.f32 %v2259_v3, %v2253_v52 }
 0x3ff   :  { %v2091_v59 = vpop.f32.mrf.mxu2  ;;  %v2104_v12 = vpop.f32.mrf.mxu3 }
 0x400   :  { %v2261_v9 = vmul.f32 0.7978846, %v2260_v5 }
 0x402   :  { %3852 = vtanh.f32 %v2261_v9 }
 0x408   :  { %v3853_v49 = vpop.eup %3852 }
 0x409   :  { %v2263_v53 = vadd.f32 1.0, %v3853_v49 }
 0x40b   :  { %v4811_v1 = vmul.f32 %v2263_v53, %v2256_v35 }
 0x40d   :  { %v2269_v10 = vsel %vm62_vm1, %v4811_v1, 0.0 }
 0x40e   :  { %v2270_v18 = vrot.slane %v2269_v10, 4 }
 0x410   :  { %v2271_v4 = vadd.f32 %v2270_v18, %v2269_v10 }
 0x412   :  { %v2272_v0 = vrot.slane %v2271_v4, 2 }
 0x414   :  { %v2273_v13 = vadd.f32 %v2272_v0, %v2271_v4 }
 0x416   :  { %v2274_v6 = vrot.slane %v2273_v13, 1 }
 0x418   :  { %v2275_v46 = vadd.f32 %v2274_v6, %v2273_v13 }
 0x41a   :  { %v2277_v62 = vsel %vm62_vm1, %v2275_v46, 0 }
 0x41b   :  { %v2298_v44 = vand.u32 4294901760, %v2277_v62 }
 0x41d   :  { %v2299_v7 = vsub.f32 %v2277_v62, %v2298_v44  ;;  %2339 = vmatmul.f32.vlgmr.msra.gmra.mxu1 %v2298_v44  ;;  %2423 = vmatmul.f32.vlgmr.msrb.gmra.mxu2 %v2298_v44 }
 0x41e   :  { %2631 = vmatpush.msrb.mxu2 %v4756_v37  ;;  %2504 = vmatpush.msra.mxu1 %v4836_v15 }
 0x41f   :  { %v2300_v11 = vand.u32 4294901760, %v2299_v7 }
 0x420   :  { %2633 = vmatpush.msrb.mxu2 %v4758_v43 }
 0x421   :  { %v2301_v16 = vsub.f32 %v2299_v7, %v2300_v11 }
 0x422   :  { %2635 = vmatpush.msrb.mxu2 %v4760_v14 }
 0x423   :  { %v2302_v23 = vand.u32 4294901760, %v2301_v16 }
 0x425   :  { %2303 = vmatmul.f32.vlgmr.msrb.gmra.mxu3 %v2302_v23  ;;  %2393 = vmatmul.f32.vlgmr.msrb.gmra.mxu1 %v2300_v11 }
 0x426   :  { %2441 = vmatpush.msrb.mxu3 %v4756_v37  ;;  %2598 = vmatpush.msrb.mxu1 %v4729_v47 }
 0x428   :  { %2443 = vmatpush.msrb.mxu3 %v4758_v43 }
 0x42a   :  { %2445 = vmatpush.msrb.mxu3 %v4760_v14 }
 0x42d   :  { %2367 = vmatmul.f32.vlgmr.msra.gmra.mxu3 %v2299_v7 }
 0x42e   :  { %2550 = vmatpush.msra.mxu3 %v4729_v47 }
 0x435   :  { %2447 = vmatmul.f32.vlgmr.msrb.gmra.mxu3 %v2298_v44 }
 0x436   :  { %2663 = vmatpush.msrb.mxu3 %v4793_v54 }
 0x438   :  { %2669 = vmatpush.msrb.mxu3 %v4795_v42 }
 0x43a   :  { %2675 = vmatpush.msrb.mxu3 %v4800_v55 }
 0x49a   :  { %v2340_v32 = vpop.f32.mrf.mxu1 }
 0x4a0   :  { %v2424_v20 = vpop.f32.mrf.mxu2 }
 0x4a2   :  { %v2394_v26 = vpop.f32.mrf.mxu1 }
 0x4a8   :  { %v2304_v31 = vpop.f32.mrf.mxu3 }
 0x4a9   :  { %v2341_v8 = vadd.f32 %v2340_v32, %v2304_v31 }
 0x4b0   :  { %v2368_v45 = vpop.f32.mrf.mxu3 }
 0x4b1   :  { %v2369_v40 = vadd.f32 %v2368_v45, %v2341_v8 }
 0x4b3   :  { %v2395_v38 = vadd.f32 %v2394_v26, %v2369_v40 }
 0x4b5   :  { %v2425_v50 = vadd.f32 %v2424_v20, %v2395_v38 }
 0x4b8   :  { %v2448_v33 = vpop.f32.mrf.mxu3 }
 0x4b9   :  { %v2449_v27 = vadd.f32 %v2448_v33, %v2425_v50 }
 0x4bb   :  { %v2451_v36 = vmul.f32 0.015625, %v2449_v27 }
 0x4bd   :  { %v2453_v39 = vsel %vm742_vm4, %v2451_v36, 0 }
 0x4be   :  { %v2475_v60 = vand.u32 4294901760, %v2453_v39 }
 0x4c0   :  { %v2476_v2 = vsub.f32 %v2453_v39, %v2475_v60  ;;  %2506 = vmatmul.f32.vlgmr.msra.gmra.mxu1 %v2475_v60 }
 0x4c1   :  { %2723 = vmatpush.msra.mxu1 %v4756_v37 }
 0x4c2   :  { %2530 = vmatmul.f32.vlgmr.msra.gmra.mxu2 %v2476_v2  ;;  %v2477_v52 = vand.u32 4294901760, %v2476_v2 }
 0x4c3   :  { %2725 = vmatpush.msra.mxu1 %v4758_v43  ;;  %2751 = vmatpush.msra.mxu2 %v4774_v58 }
 0x4c4   :  { %2554 = vmatmul.f32.vlgmr.msra.gmra.mxu3 %v2477_v52  ;;  %v2478_v24 = vsub.f32 %v2476_v2, %v2477_v52 }
 0x4c5   :  { %2727 = vmatpush.msra.mxu1 %v4760_v14  ;;  %2779 = vmatpush.msra.mxu3 %v4756_v37 }
 0x4c6   :  { %v2479_v56 = vand.u32 4294901760, %v2478_v24  ;;  %2755 = vmatpush.msra.mxu2 %v4777_v28 }
 0x4c7   :  { %2781 = vmatpush.msra.mxu3 %v4758_v43 }
 0x4c8   :  { %2480 = vmatmul.f32.vlgmr.msra.gmra.mxu0 %v2479_v56  ;;  %2600 = vmatmul.f32.vlgmr.msrb.gmra.mxu1 %v2475_v60 }
 0x4c9   :  { %2696 = vmatpush.msra.mxu0 %v4764_v17  ;;  %2783 = vmatpush.msra.mxu3 %v4760_v14 }
 0x4ca   :  { %2759 = vmatpush.msra.mxu2 %v4781_v22  ;;  %2850 = vmatpush.msrb.mxu1 %v4836_v15 }
 0x4cb   :  { %2699 = vmatpush.msra.mxu0 %v4767_v41 }
 0x4cd   :  { %2702 = vmatpush.msra.mxu0 %v4770_v19 }
 0x4d0   :  { %2578 = vmatmul.f32.vlgmr.msrb.gmra.mxu0 %v2475_v60 }
 0x4d1   :  { %2820 = vmatpush.msrb.mxu0 %v4729_v47 }
 0x53d   :  { %v2507_v61 = vpop.f32.mrf.mxu1 }
 0x545   :  { %v2481_v34 = vpop.f32.mrf.mxu0  ;;  %v2531_v57 = vpop.f32.mrf.mxu2 }
 0x546   :  { %v2508_v48 = vadd.f32 %v2507_v61, %v2481_v34  ;;  %v2601_v9 = vpop.f32.mrf.mxu1 }
 0x547   :  { %v2555_v3 = vpop.f32.mrf.mxu3 }
 0x548   :  { %v2532_v63 = vadd.f32 %v2531_v57, %v2508_v48 }
 0x54a   :  { %v2556_v5 = vadd.f32 %v2555_v3, %v2532_v63 }
 0x54d   :  { %v2579_v59 = vpop.f32.mrf.mxu0 }
 0x54e   :  { %v2580_v12 = vadd.f32 %v2579_v59, %v2556_v5  ;;  %v2961_v59 = vld [vmem:[%s4958_s4 + $0x8] sm:$0xf] }
 0x550   :  { %v2602_v49 = vadd.f32 %v2601_v9, %v2580_v12  ;;  %v2968_v12 = vunpack.c.l.b16 %v2961_v59 }
 0x552   :  { %v2604_v35 = vperm.slane %v2602_v49, 0  ;;  %v2970_v9 = vpack.c.b16 %v2968_v12, %v2968_v12 }
 0x554   :  { %v4857_v53 = vsub.f32 %v4811_v1, %v2604_v35  ;;  %v2976_v49 = vsel %vm66_vm0, %v2970_v9, 0  ;;  %v3844_v35 = vld [vmem:[%s4958_s4] sm:$0xff] }
 0x556   :  { %v2606_v10 = vmul.f32 %v4857_v53, %v4857_v53 }
 0x558   :  { %v2607_v18 = vsel %vm62_vm1, %v2606_v10, 0.0 }
 0x559   :  { %v2608_v4 = vrot.slane %v2607_v18, 4 }
 0x55b   :  { %v2609_v0 = vadd.f32 %v2608_v4, %v2607_v18 }
 0x55d   :  { %v2610_v13 = vrot.slane %v2609_v0, 2 }
 0x55f   :  { %v2611_v6 = vadd.f32 %v2610_v13, %v2609_v0 }
 0x561   :  { %v2612_v46 = vrot.slane %v2611_v6, 1 }
 0x563   :  { %v2613_v62 = vadd.f32 %v2612_v46, %v2611_v6 }
 0x565   :  { %v2615_v44 = vsel %vm62_vm1, %v2613_v62, 0 }
 0x566   :  { %v2636_v7 = vand.u32 4294901760, %v2615_v44 }
 0x568   :  { %2677 = vmatmul.f32.vlgmr.msrb.gmra.mxu3 %v2636_v7  ;;  %v2637_v11 = vsub.f32 %v2615_v44, %v2636_v7 }
 0x569   :  { %2896 = vmatpush.msrb.mxu3 %v4729_v47 }
 0x56a   :  { %2705 = vmatmul.f32.vlgmr.msra.gmra.mxu0 %v2637_v11  ;;  %v2638_v1 = vand.u32 4294901760, %v2637_v11 }
 0x56b   :  { %2922 = vmatpush.msra.mxu0 %v4829_v30 }
 0x56c   :  { %2731 = vmatmul.f32.vlgmr.msra.gmra.mxu1 %v2638_v1  ;;  %v2639_v16 = vsub.f32 %v2637_v11, %v2638_v1 }
 0x56d   :  { %2944 = vmatpush.msra.mxu1 %v4729_v47 }
 0x56e   :  { %v2640_v23 = vand.u32 4294901760, %v2639_v16 }
 0x570   :  { %2641 = vmatmul.f32.vlgmr.msrb.gmra.mxu2 %v2640_v23  ;;  %2785 = vmatmul.f32.vlgmr.msra.gmra.mxu3 %v2636_v7 }
 0x571   :  { %2873 = vmatpush.msrb.mxu2 %v4825_v25  ;;  %3024 = vmatpush.msra.mxu3 %v4756_v37 }
 0x573   :  { %3026 = vmatpush.msra.mxu3 %v4758_v43 }
 0x575   :  { %3028 = vmatpush.msra.mxu3 %v4760_v14 }
 0x578   :  { %2761 = vmatmul.f32.vlgmr.msra.gmra.mxu2 %v2636_v7  ;;  %v2950_v7 = vrot.slane %v4735_v21, 6 }
 0x579   :  { %2984 = vmatpush.bf16.msra.mxu2 %v2976_v49 }
 0x57d   :  { %2985 = vmatpush.bf16.msra.mxu2 %v3844_v35 }
 0x5e7   :  { %v2706_v8 = vpop.f32.mrf.mxu0 }
 0x5e9   :  { %v2732_v40 = vpop.f32.mrf.mxu1 }
 0x5eb   :  { %v2678_v29 = vpop.f32.mrf.mxu3 }
 0x5f3   :  { %v2642_v32 = vpop.f32.mrf.mxu2  ;;  %v2786_v50 = vpop.f32.mrf.mxu3 }
 0x5f4   :  { %v2679_v31 = vadd.f32 %v2678_v29, %v2642_v32  ;;  %v2955_v29 = vperm.slane %v4735_v21, 7 }
 0x5f6   :  { %v2707_v45 = vadd.f32 %v2706_v8, %v2679_v31 }
 0x5f8   :  { %v2733_v26 = vadd.f32 %v2732_v40, %v2707_v45  ;;  %v4903_v40 = vld [vmem:[%s4963_s9 + $0x10] sm:$0x7]  ;;  %s3888_s9 = smov [#allocation2]  }
 0x5f9   :  { %s3694_s24 = sshll.u32 %s3888_s9, 4  ;;  %s3695_s24 = int_to_ptr.vmem [resolvable:$true] %s3694_s24 }
 0x5fb   :  { %v2762_v38 = vpop.f32.mrf.mxu2 }
 0x5fc   :  { %v2763_v20 = vadd.f32 %v2762_v38, %v2733_v26  ;;  %v2962_v26 = vperm.slane %v4903_v40, 0 }
 0x5fe   :  { %v2787_v33 = vadd.f32 %v2786_v50, %v2763_v20 }
 0x600   :  { %v2789_v27 = vmul.f32 0.015625, %v2787_v33 }
 0x602   :  { %v2790_v36 = vadd.f32 1e-05, %v2789_v27 }
 0x604   :  { %3854 = vrsqrt.f32 %v2790_v36  ;;  %vm2797_vm9 = vweird.f32 %v2790_v36 }
 0x60a   :  { %v3855_v39 = vpop.eup %3854 }
 0x60b   :  { %v2792_v60 = vmul.f32 %v3855_v39, %v2790_v36  ;;  %vm2798_vm8 = vweird.f32 %v3855_v39 }
 0x60c   :  { %vm2799_vm10 = vmor %vm2797_vm9, %vm2798_vm8 }
 0x60d   :  { %v2793_v2 = vmul.f32 %v3855_v39, %v2792_v60 }
 0x60f   :  { %v2794_v52 = vmul.f32 0.5, %v2793_v2 }
 0x611   :  { %v2795_v24 = vsub.f32 1.5, %v2794_v52 }
 0x613   :  { %v2796_v56 = vmul.f32 %v3855_v39, %v2795_v24 }
 0x615   :  { %v2800_v61 = vsel %vm2799_vm10, %v3855_v39, %v2796_v56 }
 0x616   :  { %v2802_v34 = vsel %vm742_vm4, %v2800_v61, 0 }
 0x617   :  { %v2821_v48 = vand.u32 4294901760, %v2802_v34 }
 0x619   :  { %2852 = vmatmul.f32.vlgmr.msrb.gmra.mxu1 %v2821_v48  ;;  %v2822_v57 = vsub.f32 %v2802_v34, %v2821_v48 }
 0x61a   :  { %3089 = vmatpush.msrb.mxu1 %v4764_v17 }
 0x61b   :  { %2876 = vmatmul.f32.vlgmr.msrb.gmra.mxu2 %v2822_v57  ;;  %v2823_v63 = vand.u32 4294901760, %v2822_v57 }
 0x61c   :  { %3092 = vmatpush.msrb.mxu1 %v4767_v41  ;;  %3202 = vmatpush.msrb.mxu2 %v4729_v47 }
 0x61d   :  { %2900 = vmatmul.f32.vlgmr.msrb.gmra.mxu3 %v2823_v63  ;;  %v2824_v3 = vsub.f32 %v2822_v57, %v2823_v63 }
 0x61e   :  { %3095 = vmatpush.msrb.mxu1 %v4770_v19  ;;  %3116 = vmatpush.msrb.mxu3 %v4756_v37 }
 0x61f   :  { %v2825_v5 = vand.u32 4294901760, %v2824_v3 }
 0x620   :  { %3118 = vmatpush.msrb.mxu3 %v4758_v43 }
 0x621   :  { %2826 = vmatmul.f32.vlgmr.msrb.gmra.mxu0 %v2825_v5  ;;  %2946 = vmatmul.f32.vlgmr.msra.gmra.mxu1 %v2821_v48 }
 0x622   :  { %3056 = vmatpush.msrb.mxu0 %v4793_v54  ;;  %3172 = vmatpush.msra.mxu1 %v4756_v37 }
 0x623   :  { %3120 = vmatpush.msrb.mxu3 %v4760_v14 }
 0x624   :  { %3062 = vmatpush.msrb.mxu0 %v4795_v42  ;;  %3174 = vmatpush.msra.mxu1 %v4758_v43 }
 0x626   :  { %3068 = vmatpush.msrb.mxu0 %v4800_v55  ;;  %3176 = vmatpush.msra.mxu1 %v4760_v14 }
 0x629   :  { %2924 = vmatmul.f32.vlgmr.msra.gmra.mxu0 %v2821_v48 }
 0x62a   :  { %3144 = vmatpush.msra.mxu0 %v4774_v58 }
 0x62c   :  { %3148 = vmatpush.msra.mxu0 %v4777_v28 }
 0x62e   :  { %3152 = vmatpush.msra.mxu0 %v4781_v22 }
 0x696   :  { %v2853_v10 = vpop.f32.mrf.mxu1 }
 0x69e   :  { %v2827_v18 = vpop.f32.mrf.mxu0  ;;  %v2877_v0 = vpop.f32.mrf.mxu2 }
 0x69f   :  { %v2854_v4 = vadd.f32 %v2853_v10, %v2827_v18  ;;  %v2947_v11 = vpop.f32.mrf.mxu1 }
 0x6a0   :  { %v2901_v6 = vpop.f32.mrf.mxu3 }
 0x6a1   :  { %v2878_v13 = vadd.f32 %v2877_v0, %v2854_v4 }
 0x6a3   :  { %v2902_v46 = vadd.f32 %v2901_v6, %v2878_v13 }
 0x6a6   :  { %v2925_v62 = vpop.f32.mrf.mxu0 }
 0x6a7   :  { %v2926_v44 = vadd.f32 %v2925_v62, %v2902_v46 }
 0x6a9   :  { %v2948_v1 = vadd.f32 %v2947_v11, %v2926_v44 }
 0x6ab   :  { %v2952_v16 = vmul.f32 %v2950_v7, %v2948_v1 }
 0x6ad   :  { %v2953_v23 = vperm.slane %v2952_v16, 0 }
 0x6af   :  { %v2954_v32 = vmul.f32 %v2953_v23, %v4857_v53 }
 0x6b1   :  { %v2956_v31 = vadd.f32 %v2955_v29, %v2954_v32 }
 0x6b3   :  { %v2957_v8 = vadd.f32 %v2956_v31, %v4805_v51 }
 0x6b5   :  { %v2958_v45 = vpack.c.bf16 %v2957_v8, %v2957_v8 }
 0x6b7   :  { %3817 = vmatmul.msk.bf16.vlgmr.msra.gmra.mxu2 %vm62_vm1, %v2958_v45 }
 0x6b8   :  { %3304 = vmatpush.msra.mxu2 %v4829_v30 }
 0x73a   :  { %v2987_v38 = vpop.f32.mrf.mxu2 }
 0x73b   :  { %v2988_v20 = vadd.f32 %v2987_v38, %v2962_v26 }
 0x73d   :  { %v2992_v21 = vmul.f32 0.044715, %v2988_v20  ;;  %v2991_v39 = vmul.f32 0.5, %v2988_v20 }
 0x73f   :  { %v2993_v50 = vmul.f32 %v2992_v21, %v2988_v20 }
 0x741   :  { %v2994_v53 = vmul.f32 %v2993_v50, %v2988_v20 }
 0x742   :  { %v2989_v33 = vpop.f32.mrf.mxu2 }
 0x743   :  { %v2995_v27 = vadd.f32 %v2994_v53, %v2988_v20 }
 0x745   :  { %v2996_v51 = vmul.f32 0.7978846, %v2995_v27 }
 0x747   :  { %3856 = vtanh.f32 %v2996_v51 }
 0x74d   :  { %v3857_v36 = vpop.eup %3856 }
 0x74e   :  { %v2998_v60 = vadd.f32 1.0, %v3857_v36 }
 0x750   :  { %v4906_v2 = vmul.f32 %v2998_v60, %v2991_v39 }
 0x752   :  { %v3000_v52 = vsel %vm62_vm1, %v4906_v2, 0.0 }
 0x753   :  { %v3001_v24 = vrot.slane %v3000_v52, 4 }
 0x755   :  { %v3002_v56 = vadd.f32 %v3001_v24, %v3000_v52 }
 0x757   :  { %v3003_v61 = vrot.slane %v3002_v56, 2 }
 0x759   :  { %v3004_v34 = vadd.f32 %v3003_v61, %v3002_v56 }
 0x75b   :  { %v3005_v48 = vrot.slane %v3004_v34, 1 }
 0x75d   :  { %v3006_v57 = vadd.f32 %v3005_v48, %v3004_v34 }
 0x75f   :  { %v3008_v63 = vsel %vm62_vm1, %v3006_v57, 0 }
 0x760   :  { %v3029_v3 = vand.u32 4294901760, %v3008_v63 }
 0x762   :  { %v3030_v5 = vsub.f32 %v3008_v63, %v3029_v3  ;;  %3070 = vmatmul.f32.vlgmr.msrb.gmra.mxu0 %v3029_v3 }
 0x763   :  { %3255 = vmatpush.msrb.mxu0 %v4825_v25 }
 0x764   :  { %3098 = vmatmul.f32.vlgmr.msrb.gmra.mxu1 %v3030_v5  ;;  %v3031_v59 = vand.u32 4294901760, %v3030_v5 }
 0x765   :  { %3278 = vmatpush.msrb.mxu1 %v4729_v47 }
 0x766   :  { %v3032_v12 = vsub.f32 %v3030_v5, %v3031_v59 }
 0x768   :  { %v3033_v9 = vand.u32 4294901760, %v3032_v12 }
 0x76a   :  { %3034 = vmatmul.f32.vlgmr.msra.gmra.mxu3 %v3033_v9  ;;  %3154 = vmatmul.f32.vlgmr.msra.gmra.mxu0 %v3029_v3 }
 0x76b   :  { %3232 = vmatpush.msra.mxu3 %v4836_v15  ;;  %3359 = vmatpush.msra.mxu0 %v4756_v37 }
 0x76c   :  { %3178 = vmatmul.f32.vlgmr.msra.gmra.mxu1 %v3029_v3 }
 0x76d   :  { %3391 = vmatpush.msra.mxu1 %v4793_v54  ;;  %3361 = vmatpush.msra.mxu0 %v4758_v43 }
 0x76f   :  { %3397 = vmatpush.msra.mxu1 %v4795_v42  ;;  %3363 = vmatpush.msra.mxu0 %v4760_v14 }
 0x771   :  { %3403 = vmatpush.msra.mxu1 %v4800_v55 }
 0x772   :  { %3124 = vmatmul.f32.vlgmr.msrb.gmra.mxu3 %v3031_v59 }
 0x773   :  { %3326 = vmatpush.msrb.mxu3 %v4729_v47 }
 0x7df   :  { %v3071_v49 = vpop.f32.mrf.mxu0 }
 0x7e1   :  { %v3099_v10 = vpop.f32.mrf.mxu1 }
 0x7e7   :  { %v3155_v6 = vpop.f32.mrf.mxu0 }
 0x7e9   :  { %v3179_v46 = vpop.f32.mrf.mxu1 }
 0x7ed   :  { %v3035_v35 = vpop.f32.mrf.mxu3 }
 0x7ee   :  { %v3072_v18 = vadd.f32 %v3071_v49, %v3035_v35 }
 0x7f0   :  { %v3100_v4 = vadd.f32 %v3099_v10, %v3072_v18 }
 0x7f5   :  { %v3125_v0 = vpop.f32.mrf.mxu3 }
 0x7f6   :  { %v3126_v13 = vadd.f32 %v3125_v0, %v3100_v4 }
 0x7f8   :  { %v3156_v54 = vadd.f32 %v3155_v6, %v3126_v13 }
 0x7fa   :  { %v3180_v62 = vadd.f32 %v3179_v46, %v3156_v54 }
 0x7fc   :  { %v3182_v44 = vmul.f32 0.015625, %v3180_v62 }
 0x7fe   :  { %v3184_v42 = vsel %vm742_vm4, %v3182_v44, 0 }
 0x7ff   :  { %v3203_v7 = vand.u32 4294901760, %v3184_v42 }
 0x801   :  { %3234 = vmatmul.f32.vlgmr.msra.gmra.mxu3 %v3203_v7  ;;  %v3204_v55 = vsub.f32 %v3184_v42, %v3203_v7 }
 0x802   :  { %3451 = vmatpush.msra.mxu3 %v4756_v37 }
 0x803   :  { %3258 = vmatmul.f32.vlgmr.msrb.gmra.mxu0 %v3204_v55  ;;  %v3205_v11 = vand.u32 4294901760, %v3204_v55 }
 0x804   :  { %3453 = vmatpush.msra.mxu3 %v4758_v43  ;;  %3479 = vmatpush.msrb.mxu0 %v4774_v58 }
 0x805   :  { %3282 = vmatmul.f32.vlgmr.msrb.gmra.mxu1 %v3205_v11  ;;  %v3206_v1 = vsub.f32 %v3204_v55, %v3205_v11 }
 0x806   :  { %3455 = vmatpush.msra.mxu3 %v4760_v14  ;;  %3507 = vmatpush.msrb.mxu1 %v4756_v37 }
 0x807   :  { %v3207_v16 = vand.u32 4294901760, %v3206_v1  ;;  %3483 = vmatpush.msrb.mxu0 %v4777_v28 }
 0x808   :  { %3509 = vmatpush.msrb.mxu1 %v4758_v43 }
 0x809   :  { %3208 = vmatmul.f32.vlgmr.msrb.gmra.mxu2 %v3207_v16  ;;  %3328 = vmatmul.f32.vlgmr.msrb.gmra.mxu3 %v3203_v7  ;;  %v3679_v16 = vrot.slane %v4903_v40, 1 }
 0x80a   :  { %3424 = vmatpush.msrb.mxu2 %v4764_v17  ;;  %3511 = vmatpush.msrb.mxu1 %v4760_v14 }
 0x80b   :  { %3487 = vmatpush.msrb.mxu0 %v4781_v22  ;;  %3578 = vmatpush.msrb.mxu3 %v4836_v15 }
 0x80c   :  { %3427 = vmatpush.msrb.mxu2 %v4767_v41 }
 0x80e   :  { %3430 = vmatpush.msrb.mxu2 %v4770_v19 }
 0x811   :  { %3306 = vmatmul.f32.vlgmr.msra.gmra.mxu2 %v3203_v7 }
 0x812   :  { %3548 = vmatpush.msra.mxu2 %v4729_v47 }
 0x880   :  { %v3259_v28 = vpop.f32.mrf.mxu0 }
 0x882   :  { %v3283_v29 = vpop.f32.mrf.mxu1 }
 0x884   :  { %v3235_v37 = vpop.f32.mrf.mxu3 }
 0x88c   :  { %v3209_v58 = vpop.f32.mrf.mxu2  ;;  %v3329_v31 = vpop.f32.mrf.mxu3 }
 0x88d   :  { %v3236_v43 = vadd.f32 %v3235_v37, %v3209_v58 }
 0x88f   :  { %v3260_v23 = vadd.f32 %v3259_v28, %v3236_v43  ;;  %v3684_v28 = vperm.slane %v4903_v40, 2 }
 0x891   :  { %v3284_v17 = vadd.f32 %v3283_v29, %v3260_v23 }
 0x894   :  { %v3307_v32 = vpop.f32.mrf.mxu2 }
 0x895   :  { %v3308_v14 = vadd.f32 %v3307_v32, %v3284_v17 }
 0x897   :  { %v3330_v22 = vadd.f32 %v3329_v31, %v3308_v14 }
 0x899   :  { %v3332_v8 = vperm.slane %v3330_v22, 0 }
 0x89b   :  { %v4937_v15 = vsub.f32 %v4906_v2, %v3332_v8 }
 0x89d   :  { %v3334_v41 = vmul.f32 %v4937_v15, %v4937_v15 }
 0x89f   :  { %v3335_v19 = vsel %vm62_vm1, %v3334_v41, 0.0 }
 0x8a0   :  { %v3336_v45 = vrot.slane %v3335_v19, 4 }
 0x8a2   :  { %v3337_v26 = vadd.f32 %v3336_v45, %v3335_v19 }
 0x8a4   :  { %v3338_v38 = vrot.slane %v3337_v26, 2 }
 0x8a6   :  { %v3339_v20 = vadd.f32 %v3338_v38, %v3337_v26 }
 0x8a8   :  { %v3340_v21 = vrot.slane %v3339_v20, 1 }
 0x8aa   :  { %v3341_v50 = vadd.f32 %v3340_v21, %v3339_v20 }
 0x8ac   :  { %v3343_v53 = vsel %vm62_vm1, %v3341_v50, 0 }
 0x8ad   :  { %v3364_v33 = vand.u32 4294901760, %v3343_v53 }
 0x8af   :  { %3405 = vmatmul.f32.vlgmr.msra.gmra.mxu1 %v3364_v33  ;;  %v3365_v27 = vsub.f32 %v3343_v53, %v3364_v33 }
 0x8b0   :  { %3624 = vmatpush.msra.mxu1 %v4729_v47 }
 0x8b1   :  { %3433 = vmatmul.f32.vlgmr.msrb.gmra.mxu2 %v3365_v27  ;;  %v3366_v51 = vand.u32 4294901760, %v3365_v27 }
 0x8b2   :  { %3650 = vmatpush.msrb.mxu2 %v4829_v30 }
 0x8b3   :  { %v3367_v36 = vsub.f32 %v3365_v27, %v3366_v51  ;;  %3459 = vmatmul.f32.vlgmr.msra.gmra.mxu3 %v3366_v51 }
 0x8b4   :  { %3672 = vmatpush.msra.mxu3 %v4729_v47 }
 0x8b5   :  { %v3368_v39 = vand.u32 4294901760, %v3367_v36 }
 0x8b7   :  { %3369 = vmatmul.f32.vlgmr.msra.gmra.mxu0 %v3368_v39  ;;  %3513 = vmatmul.f32.vlgmr.msrb.gmra.mxu1 %v3364_v33 }
 0x8b8   :  { %3601 = vmatpush.msra.mxu0 %v4825_v25 }
 0x8bf   :  { %3489 = vmatmul.f32.vlgmr.msrb.gmra.mxu0 %v3364_v33 }
 0x92c   :  { %v3406_v60 = vpop.f32.mrf.mxu1 }
 0x934   :  { %v3370_v2 = vpop.f32.mrf.mxu0  ;;  %v3434_v24 = vpop.f32.mrf.mxu2 }
 0x935   :  { %v3407_v52 = vadd.f32 %v3406_v60, %v3370_v2  ;;  %v3514_v30 = vpop.f32.mrf.mxu1 }
 0x936   :  { %v3460_v61 = vpop.f32.mrf.mxu3 }
 0x937   :  { %v3435_v56 = vadd.f32 %v3434_v24, %v3407_v52 }
 0x939   :  { %v3461_v34 = vadd.f32 %v3460_v61, %v3435_v56 }
 0x93c   :  { %v3490_v48 = vpop.f32.mrf.mxu0 }
 0x93d   :  { %v3491_v57 = vadd.f32 %v3490_v48, %v3461_v34 }
 0x93f   :  { %v3515_v63 = vadd.f32 %v3514_v30, %v3491_v57 }
 0x941   :  { %v3517_v3 = vmul.f32 0.015625, %v3515_v63 }
 0x943   :  { %v3518_v5 = vadd.f32 1e-05, %v3517_v3 }
 0x945   :  { %3858 = vrsqrt.f32 %v3518_v5  ;;  %vm3525_vm12 = vweird.f32 %v3518_v5 }
 0x94b   :  { %v3859_v47 = vpop.eup %3858 }
 0x94c   :  { %v3520_v59 = vmul.f32 %v3859_v47, %v3518_v5  ;;  %vm3526_vm11 = vweird.f32 %v3859_v47 }
 0x94d   :  { %vm3527_vm13 = vmor %vm3525_vm12, %vm3526_vm11 }
 0x94e   :  { %v3521_v12 = vmul.f32 %v3859_v47, %v3520_v59 }
 0x950   :  { %v3522_v9 = vmul.f32 0.5, %v3521_v12 }
 0x952   :  { %v3523_v25 = vsub.f32 1.5, %v3522_v9 }
 0x954   :  { %v3524_v49 = vmul.f32 %v3859_v47, %v3523_v25 }
 0x956   :  { %v3528_v35 = vsel %vm3527_vm13, %v3859_v47, %v3524_v49 }
 0x957   :  { %v3530_v10 = vsel %vm742_vm4, %v3528_v35, 0 }
 0x958   :  { %v3549_v18 = vand.u32 4294901760, %v3530_v10 }
 0x95a   :  { %3580 = vmatmul.f32.vlgmr.msrb.gmra.mxu3 %v3549_v18  ;;  %v3550_v4 = vsub.f32 %v3530_v10, %v3549_v18 }
 0x95c   :  { %3604 = vmatmul.f32.vlgmr.msra.gmra.mxu0 %v3550_v4  ;;  %v3551_v0 = vand.u32 4294901760, %v3550_v4 }
 0x95e   :  { %3628 = vmatmul.f32.vlgmr.msra.gmra.mxu1 %v3551_v0  ;;  %v3552_v13 = vsub.f32 %v3550_v4, %v3551_v0 }
 0x960   :  { %v3553_v6 = vand.u32 4294901760, %v3552_v13 }
 0x962   :  { %3554 = vmatmul.f32.vlgmr.msra.gmra.mxu2 %v3553_v6  ;;  %3674 = vmatmul.f32.vlgmr.msra.gmra.mxu3 %v3549_v18 }
 0x96a   :  { %3652 = vmatmul.f32.vlgmr.msrb.gmra.mxu2 %v3549_v18 }
 0x9d9   :  { %v3605_v44 = vpop.f32.mrf.mxu0 }
 0x9db   :  { %v3629_v7 = vpop.f32.mrf.mxu1 }
 0x9dd   :  { %v3581_v54 = vpop.f32.mrf.mxu3 }
 0x9e5   :  { %v3555_v46 = vpop.f32.mrf.mxu2  ;;  %v3675_v37 = vpop.f32.mrf.mxu3 }
 0x9e6   :  { %v3582_v62 = vadd.f32 %v3581_v54, %v3555_v46 }
 0x9e8   :  { %v3606_v42 = vadd.f32 %v3605_v44, %v3582_v62 }
 0x9ea   :  { %v3630_v55 = vadd.f32 %v3629_v7, %v3606_v42 }
 0x9ed   :  { %v3653_v11 = vpop.f32.mrf.mxu2 }
 0x9ee   :  { %v3654_v1 = vadd.f32 %v3653_v11, %v3630_v55 }
 0x9f0   :  { %v3676_v58 = vadd.f32 %v3675_v37, %v3654_v1 }
 0x9f2   :  { %v3681_v43 = vmul.f32 %v3679_v16, %v3676_v58 }
 0x9f4   :  { %v3682_v23 = vperm.slane %v3681_v43, 0 }
 0x9f6   :  { %v3683_v29 = vmul.f32 %v3682_v23, %v4937_v15 }
 0x9f8   :  { %v3685_v17 = vadd.f32 %v3684_v28, %v3683_v29 }
 0x9fa   :  { %v3686_v32 = vpack.c.bf16 %v3685_v17, %v3685_v17 }
 0x9fc   :  { %3688 = vst.msk [vmem:[#allocation2] sm:$0xf] %vm3687_vm14, %v3686_v32 }
 0x9fd   :  { %3699 = dma.vmem_to_hbm [thread:$0]  %s3695_s24, 64, %s3697_s27, [#allocation3]  }
 0x9fe   :  { %3886 = dma.done.wait [#allocation3], 64  }
 0x9ff   :  { %3887 = vsyncadd [#allocation3], 4294967232 }
 0xa00   :  { %3704 = vsyncpa [#allocation3], 1 }

</bundles_post_ra>
